<compile_context>
chip_gen: v7x
topology: tpu7x:2x2x1
jax: 0.10.0
libtpu: 0.0.40
codegen_flags: <defaults>
</compile_context>

<pallas_src>
import math

import jax
import jax.numpy as jnp
from jax.experimental import pallas as pl
from jax.experimental.pallas import tpu as pltpu

# ---- model dimensions -------------------------------------------------------
HID      = 1024   # hard-coded hid_dim in BaseModel.__init__
EMB      = 300    # answer-embedding / GloVe dim (hard-coded in the heads)
B        = 2      # batch
SEQ      = 8      # question length
NUM_OBJS = 8      # number of visual objects
V_DIM    = 64     # object feature dim (small stand-in for 2048)
VOCAB    = 50     # word vocabulary (stand-in for the injected w_emb)
NUM_ANS  = 16     # classifier output classes (stand-in for the injected classifier)
NUM_CAND = 16     # rows of the ans_embed buffer (answer candidates)
TYPE_PAD = 128    # lane-aligned padding for type_fc's 4 output logits

N_FC = 4          # number of streamed fc K-blocks
N_STEPS = N_FC + 2  # + 2 head steps (type_fc, logit_fc_emb)

_SQRT2 = math.sqrt(2.0)
_BF16 = jnp.bfloat16


def _erf(x):
    # Abramowitz & Stegun 7.1.26 (max abs error ~1.5e-7); exp goes to the EUP.
    a1, a2, a3, a4, a5 = 0.254829592, -0.284496736, 1.421413741, -1.453152027, 1.061405429
    p = 0.3275911
    ax = jnp.abs(x)
    t = 1.0 / (1.0 + p * ax)
    poly = ((((a5 * t + a4) * t + a3) * t + a2) * t + a1) * t
    y = 1.0 - poly * jnp.exp(-ax * ax)
    return jnp.where(x >= 0, y, -y)


def _gelu(x):
    # exact (erf-based) GeLU, matching `gelu()` in the PyTorch module
    return x * 0.5 * (1.0 + _erf(x * (1.0 / _SQRT2)))


def _relu(x):
    return jnp.maximum(x, 0.0)


def _layer_norm(x, w, b, eps=1e-12):
    # BertLayerNorm: TF-style (eps inside the sqrt)
    u = jnp.mean(x, axis=-1, keepdims=True)
    s = jnp.mean((x - u) * (x - u), axis=-1, keepdims=True)
    return w * ((x - u) / jnp.sqrt(s + eps)) + b


def _dot(a, b):
    return jnp.dot(a, b, preferred_element_type=jnp.float32)


# ---------------------------------------------------------------------------
# Fused kernel: question encoder -> attention -> joint repr (fc) -> classifier
#               -> type_fc head -> logit_fc_emb head (L2-normalized).
# Grid = (6,) "arbitrary":
#   steps 0..3 : stream one [HID, HID] K-block of the 4H x H fc weight each.
#                step 0 additionally runs the encoder / attention / q_net /
#                v_net and stashes the 4 joint parts in scratch.
#                step 3 finalizes joint_repr (GeLU) and the classifier logits.
#   steps 4..5 : stream one [HID, 2H] head layer-1 weight each (head 0 =
#                type_fc, head 1 = logit_fc_emb) and write that head's output.
# ---------------------------------------------------------------------------
def _fused_kernel(
        fc_sched_ref, w1_sched_ref,                         # scalar prefetch (SMEM, unused in body)
        wemb_ref, v_ref,
        wq_enc_ref, bq_enc_ref,
        wv_att_ref, bv_att_ref, wq_att_ref, bq_att_ref, w_att_ref, b_att_ref,
        wqn_ref, bqn_ref, wvn_ref, bvn_ref,
        wfc_ref, bfc_ref, wcls_ref, bcls_ref,
        w1_ref, b1_ref, g_ref, be_ref,
        w2t_ref, b2t_ref, w2g_ref, b2g_ref,
        logits_ref, type_ref, gen_ref,
        parts_sc, acc_sc, jr_sc):
    del fc_sched_ref, w1_sched_ref
    k = pl.program_id(0)

    @pl.when(k == 0)
    def _():
        b, _, _ = wemb_ref.shape
        _, nobj, dv = v_ref.shape

        # ---- stand-in q_emb --------------------------------------------------
        # TODO(synk): q_emb is an injected GRU in the original code; a mean-pool
        # + tanh(Linear(300, 1024)) stand-in with identical output shape is used.
        pooled = jnp.mean(wemb_ref[...], axis=1).astype(_BF16)               # (B, EMB)
        q_feat = jnp.tanh(_dot(pooled, wq_enc_ref[...]) + bq_enc_ref[...])   # (B, HID) f32

        # ---- v_att (UpDn attention stand-in): softmax_k( w . (relu(vW)*relu(qW)) )
        vflat = v_ref[...].reshape(b * nobj, dv).astype(_BF16)
        vp = _relu(_dot(vflat, wv_att_ref[...]) + bv_att_ref[...]).reshape(b, nobj, -1)
        qp = _relu(_dot(q_feat.astype(_BF16), wq_att_ref[...]) + bq_att_ref[...])
        joint_att = vp * qp[:, None, :]                                      # (B, K, HID)
        att_logits = jnp.sum(joint_att * w_att_ref[...][None, :, :], axis=-1)
        att_logits = att_logits + b_att_ref[...]
        att_logits = att_logits - jnp.max(att_logits, axis=-1, keepdims=True)
        att_e = jnp.exp(att_logits)
        att = att_e / jnp.sum(att_e, axis=-1, keepdims=True)                 # softmax over objs

        # ---- v_emb = (att * v).sum(1) ----------------------------------------
        v_emb = jnp.sum(att[:, :, None] * v_ref[...], axis=1)                # (B, Dv) f32

        # ---- q_net / v_net (FCNet stand-ins: Linear + ReLU) --------------------
        q_repr = _relu(_dot(q_feat.astype(_BF16), wqn_ref[...]) + bqn_ref[...])
        v_repr = _relu(_dot(v_emb.astype(_BF16), wvn_ref[...]) + bvn_ref[...])

        # joint = [q_repr, v_repr, q+v, q*v]; kept as 4 K-blocks (no concat copy)
        parts_sc[0] = q_repr.astype(_BF16)
        parts_sc[1] = v_repr.astype(_BF16)
        parts_sc[2] = (q_repr + v_repr).astype(_BF16)
        parts_sc[3] = (q_repr * v_repr).astype(_BF16)
        acc_sc[...] = jnp.zeros_like(acc_sc)

    # ---- fc: one [HID, HID] K-block of the 4H x H weight per step 0..3 -------
    @pl.when(k < N_FC)
    def _():
        kk = jnp.minimum(k, N_FC - 1)                    # defensive clamp
        acc_sc[...] += _dot(parts_sc[kk], wfc_ref[0])

    @pl.when(k == N_FC - 1)
    def _():
        jr = _gelu(acc_sc[...] + bfc_ref[...])                               # (B, HID) f32
        jr_sc[...] = jr
        # ---- classifier (stand-in single Linear) ------------------------------
        # TODO(synk): the injected classifier may be a 2-layer weight-normed MLP.
        logits_ref[...] = _dot(jr.astype(_BF16), wcls_ref[...]) + bcls_ref[...]

    # ---- heads: step 4 = type_fc, step 5 = logit_fc_emb -----------------------
    @pl.when(k >= N_FC)
    def _():
        h = jnp.maximum(k - N_FC, 0)                     # 0 = type_fc, 1 = logit_fc_emb
        x = _gelu(_dot(jr_sc[...].astype(_BF16), w1_ref[0]) + b1_ref[h])     # (B, 2H)
        x = _layer_norm(x, g_ref[h], be_ref[h])

        @pl.when(h == 0)
        def _():   # type_fc: 4 real logits in cols [0:4] (padded to 128 lanes)
            type_ref[...] = _dot(x.astype(_BF16), w2t_ref[...]) + b2t_ref[...]

        @pl.when(h == 1)
        def _():   # logit_fc_emb: exactly 300 cols -> L2 norm over the real dims
            y = _dot(x.astype(_BF16), w2g_ref[...]) + b2g_ref[...]
            nrm = jnp.sqrt(jnp.sum(y * y, axis=-1, keepdims=True))
            gen_ref[...] = y / jnp.maximum(nrm, 1e-12)


# ---------------------------------------------------------------------------
# emb_proj kernel: Linear(300,H) -> GeLU -> BertLayerNorm(H) -> Linear(H,300)
# applied to the (pre-normalized) answer-embedding buffer.  Input-independent:
# computed once per parameter set (hoisted / cached out of the forward).
# ---------------------------------------------------------------------------
def _emb_proj_kernel(ans_ref, w1_ref, b1_ref, g_ref, be_ref, w2_ref, b2_ref, out_ref):
    x = _gelu(_dot(ans_ref[...].astype(_BF16), w1_ref[...]) + b1_ref[...])
    x = _layer_norm(x, g_ref[...], be_ref[...])
    out_ref[...] = _dot(x.astype(_BF16), w2_ref[...]) + b2_ref[...]


# ---------------------------------------------------------------------------
# Wrappers
# ---------------------------------------------------------------------------
_VMEM = pl.BlockSpec(memory_space=pltpu.MemorySpace.VMEM)


def _fullmap(n):
    # whole-array block, constant block index; accepts the scalar-prefetch refs
    return lambda k, *prefetch: (0,) * n


def _full(shape):
    return pl.BlockSpec(shape, _fullmap(len(shape)))


def _fused_call(w_emb, v, params):
    b = w_emb.shape[0]
    two_h = 2 * HID

    # Block-index schedules for the streamed weights (scalar prefetch -> SMEM).
    # Padded past the grid end so any pipeline look-ahead stays in range.
    fc_sched = jnp.array([0, 1, 2, 3, 3, 3, 3, 3], dtype=jnp.int32)
    w1_sched = jnp.array([0, 0, 0, 0, 0, 1, 1, 1], dtype=jnp.int32)

    in_specs = [
        _full(w_emb.shape), _full(v.shape),
        _full(params["wq_enc"].shape), _full(params["bq_enc"].shape),
        _full(params["wv_att"].shape), _full(params["bv_att"].shape),
        _full(params["wq_att"].shape), _full(params["bq_att"].shape),
        _full(params["w_att"].shape), _full(params["b_att"].shape),
        _full(params["wqn"].shape), _full(params["bqn"].shape),
        _full(params["wvn"].shape), _full(params["bvn"].shape),
        # streamed fc K-blocks, 3-deep pipelining
        pl.BlockSpec((1, HID, HID), lambda k, fc_s, w1_s: (fc_s[k], 0, 0),
                     pipeline_mode=pl.Buffered(3)),
        _full(params["bfc"].shape),
        _full(params["wcls"].shape), _full(params["bcls"].shape),
        # streamed head layer-1 N-blocks (head 0 = type_fc, head 1 = logit_fc_emb)
        pl.BlockSpec((1, HID, two_h), lambda k, fc_s, w1_s: (w1_s[k], 0, 0)),
        _full(params["b1_heads"].shape), _full(params["g_heads"].shape),
        _full(params["be_heads"].shape),
        _full(params["w2_type"].shape), _full(params["b2_type"].shape),
        _full(params["w2_gen"].shape), _full(params["b2_gen"].shape),
    ]
    out_specs = (
        pl.BlockSpec((b, NUM_ANS), _fullmap(2)),
        pl.BlockSpec((b, TYPE_PAD), _fullmap(2)),
        pl.BlockSpec((b, EMB), _fullmap(2)),
    )
    fn = pl.pallas_call(
        _fused_kernel,
        out_shape=(jax.ShapeDtypeStruct((b, NUM_ANS), jnp.float32),
                   jax.ShapeDtypeStruct((b, TYPE_PAD), jnp.float32),
                   jax.ShapeDtypeStruct((b, EMB), jnp.float32)),
        grid_spec=pltpu.PrefetchScalarGridSpec(
            num_scalar_prefetch=2,
            grid=(N_STEPS,),
            in_specs=in_specs,
            out_specs=out_specs,
            scratch_shapes=[pltpu.VMEM((N_FC, b, HID), jnp.bfloat16),   # joint parts
                            pltpu.VMEM((b, HID), jnp.float32),          # fc accumulator
                            pltpu.VMEM((b, HID), jnp.float32)]),        # joint_repr
        compiler_params=pltpu.CompilerParams(
            # "arbitrary": scratch accumulators carry state across grid steps
            dimension_semantics=("arbitrary",),
            # single fused kernel: ~28 MiB actual; 40 MiB limit fits v7x's 64 MiB
            vmem_limit_bytes=40 * 1024 * 1024),
    )
    return fn(fc_sched, w1_sched, w_emb, v,
              params["wq_enc"], params["bq_enc"],
              params["wv_att"], params["bv_att"],
              params["wq_att"], params["bq_att"],
              params["w_att"], params["b_att"],
              params["wqn"], params["bqn"],
              params["wvn"], params["bvn"],
              params["wfc4"], params["bfc"],
              params["wcls"], params["bcls"],
              params["w1_heads"], params["b1_heads"],
              params["g_heads"], params["be_heads"],
              params["w2_type"], params["b2_type"],
              params["w2_gen"], params["b2_gen"])


def compute_all_ans_embs(params):
    """emb_proj(ans_embed) — params-only, compute once and cache."""
    fn = pl.pallas_call(
        _emb_proj_kernel,
        out_shape=jax.ShapeDtypeStruct((params["ans_embed_norm"].shape[0], EMB),
                                       jnp.float32),
        in_specs=[_VMEM] * 7,
        out_specs=_VMEM,
        compiler_params=pltpu.CompilerParams(vmem_limit_bytes=16 * 1024 * 1024),
    )
    return fn(params["ans_embed_norm"], params["wp1"], params["bp1"],
              params["gp"], params["bep"], params["wp2"], params["bp2"])


def base_model_forward(params, v, b_unused, q, labels=None, bias=None,
                       all_ans_embs=None):
    """Mirrors BaseModel.forward(v, _, q, labels, bias)."""
    del b_unused, bias
    # w_emb: embedding lookup (gather glue, done in plain JAX)
    w_emb = jnp.take(params["wemb_table"], q, axis=0)            # (B, SEQ, EMB)
    logits, type_pad, gen_embs = _fused_call(w_emb, v, params)
    type_logit = type_pad[:, :4]
    # TODO(synk): debias_loss_fn is injected externally and is None in __init__,
    # so the labels branch cannot be computed; the labels=None path gives loss=None.
    if labels is not None:
        raise NotImplementedError("debias_loss_fn is not defined in the source module")
    loss = None
    # type_wts = softmax(type_logit) in the original forward is dead code (not returned).
    if all_ans_embs is None:                                     # not cached -> compute
        all_ans_embs = compute_all_ans_embs(params)
    return gen_embs, logits, type_logit, loss, all_ans_embs


# ---------------------------------------------------------------------------
# Deterministic parameter init (synthetic, no checkpoint load). bf16 weights.
# ---------------------------------------------------------------------------
def init_params(key):
    def dense(k, fan_in, fan_out, scale=0.02, w_dtype=jnp.bfloat16):
        kw, kb = jax.random.split(k)
        w = (jax.random.normal(kw, (fan_in, fan_out), jnp.float32) * scale).astype(w_dtype)
        b = jax.random.normal(kb, (1, fan_out), jnp.float32) * scale
        return w, b

    def pad_cols(a, width):
        return jnp.pad(a, ((0, 0), (0, width - a.shape[1])))     # zero padding

    keys = jax.random.split(key, 16)
    p = {}
    p["wemb_table"] = jax.random.normal(keys[0], (VOCAB, EMB), jnp.float32) * 0.1
    p["wq_enc"], p["bq_enc"] = dense(keys[1], EMB, HID)
    p["wv_att"], p["bv_att"] = dense(keys[2], V_DIM, HID)
    p["wq_att"], p["bq_att"] = dense(keys[3], HID, HID)
    kw, kb = jax.random.split(keys[4])
    p["w_att"] = jax.random.normal(kw, (1, HID), jnp.float32) * 0.02
    p["b_att"] = jax.random.normal(kb, (1, 1), jnp.float32) * 0.02
    p["wqn"], p["bqn"] = dense(keys[5], HID, HID)
    p["wvn"], p["bvn"] = dense(keys[6], V_DIM, HID)
    wfc, p["bfc"] = dense(keys[7], 4 * HID, HID)
    p["wfc4"] = wfc.reshape(4, HID, HID)          # K-blocks: [q, v, q+v, q*v] order
    p["wcls"], p["bcls"] = dense(keys[8], HID, NUM_ANS)
    # heads: layer-1 stacked on a leading axis (0 = type_fc, 1 = logit_fc_emb)
    wt1, bt1 = dense(keys[9], HID, 2 * HID)
    we1, be1 = dense(keys[11], HID, 2 * HID)
    p["w1_heads"] = jnp.stack([wt1, we1])                          # (2, HID, 2H) bf16
    p["b1_heads"] = jnp.stack([bt1, be1])                          # (2, 1, 2H)  f32
    p["g_heads"] = jnp.ones((2, 1, 2 * HID), jnp.float32)
    p["be_heads"] = jnp.zeros((2, 1, 2 * HID), jnp.float32)
    # type_fc layer-2: 4 real cols, zero-padded only to 128 lanes
    wt2, bt2 = dense(keys[10], 2 * HID, 4, w_dtype=jnp.float32)
    p["w2_type"] = pad_cols(wt2, TYPE_PAD).astype(jnp.bfloat16)    # (2H, 128) bf16
    p["b2_type"] = pad_cols(bt2, TYPE_PAD)                         # (1, 128)  f32
    # logit_fc_emb layer-2: exactly 300 cols (no padding -> exact L2 norm)
    p["w2_gen"], p["b2_gen"] = dense(keys[12], 2 * HID, EMB)       # (2H, 300) bf16
    # emb_proj head
    p["wp1"], p["bp1"] = dense(keys[13], EMB, HID)
    p["gp"] = jnp.ones((1, HID), jnp.float32)
    p["bep"] = jnp.zeros((1, HID), jnp.float32)
    p["wp2"], p["bp2"] = dense(keys[14], HID, EMB)
    # ans_embed buffer (stand-in for the .npy load), +1e-8 then L2-normalized
    # along dim=1 exactly as in BaseModel.__init__.
    ans = jax.random.normal(keys[15], (NUM_CAND, EMB), jnp.float32) + 1e-8
    nrm = jnp.sqrt(jnp.sum(ans * ans, axis=1, keepdims=True))
    p["ans_embed_norm"] = ans / jnp.maximum(nrm, 1e-12)
    return p


# ---------------------------------------------------------------------------
# Pure-JAX reference (identical math, incl. bf16 casts) for a numeric check.
# ---------------------------------------------------------------------------
def _ref_forward(params, v, q):
    w_emb = jnp.take(params["wemb_table"], q, axis=0)
    pooled = jnp.mean(w_emb, axis=1).astype(_BF16)
    q_feat = jnp.tanh(_dot(pooled, params["wq_enc"]) + params["bq_enc"])
    b_, k_, dv = v.shape
    vflat = v.reshape(b_ * k_, dv).astype(_BF16)
    vp = _relu(_dot(vflat, params["wv_att"]) + params["bv_att"]).reshape(b_, k_, -1)
    qp = _relu(_dot(q_feat.astype(_BF16), params["wq_att"]) + params["bq_att"])
    joint_att = vp * qp[:, None, :]
    att_logits = jnp.sum(joint_att * params["w_att"][None, :, :], axis=-1) + params["b_att"]
    att = jax.nn.softmax(att_logits, axis=-1)
    v_emb = jnp.sum(att[:, :, None] * v, axis=1)
    q_repr = _relu(_dot(q_feat.astype(_BF16), params["wqn"]) + params["bqn"])
    v_repr = _relu(_dot(v_emb.astype(_BF16), params["wvn"]) + params["bvn"])
    parts = [q_repr, v_repr, q_repr + v_repr, q_repr * v_repr]
    acc = jnp.zeros((b_, HID), jnp.float32)
    for i, pt in enumerate(parts):
        acc = acc + _dot(pt.astype(_BF16), params["wfc4"][i])
    jr = _gelu(acc + params["bfc"])
    logits = _dot(jr.astype(_BF16), params["wcls"]) + params["bcls"]

    def head(i, w2, b2):
        x = _gelu(_dot(jr.astype(_BF16), params["w1_heads"][i]) + params["b1_heads"][i])
        x = _layer_norm(x, params["g_heads"][i], params["be_heads"][i])
        return _dot(x.astype(_BF16), w2) + b2

    type_logit = head(0, params["w2_type"], params["b2_type"])[:, :4]
    gen = head(1, params["w2_gen"], params["b2_gen"])
    gen = gen / jnp.maximum(jnp.sqrt(jnp.sum(gen * gen, -1, keepdims=True)), 1e-12)
    x = _gelu(_dot(params["ans_embed_norm"].astype(_BF16), params["wp1"]) + params["bp1"])
    x = _layer_norm(x, params["gp"], params["bep"])
    all_ans = _dot(x.astype(_BF16), params["wp2"]) + params["bp2"]
    return gen, logits, type_logit, all_ans


if __name__ == "__main__":
    root = jax.random.PRNGKey(0)
    kp, kv, kq = jax.random.split(root, 3)
    params = init_params(kp)
    v = jax.random.normal(kv, (B, NUM_OBJS, V_DIM), jnp.float32)
    q = jax.random.randint(kq, (B, SEQ), 0, VOCAB, dtype=jnp.int32)

    # hoisted: the answer-embedding projection is input-independent -> once.
    cached_ans = jax.block_until_ready(compute_all_ans_embs(params))

    gen_embs, logits, type_logit, loss, all_ans_embs = base_model_forward(
        params, v, None, q, labels=None, bias=None, all_ans_embs=cached_ans)
    jax.block_until_ready((gen_embs, logits, type_logit, all_ans_embs))

    assert gen_embs.shape == (B, EMB)
    assert logits.shape == (B, NUM_ANS)
    assert type_logit.shape == (B, 4)
    assert loss is None
    assert all_ans_embs.shape == (NUM_CAND, EMB)
    assert bool(jnp.all(jnp.isfinite(gen_embs)))
    assert bool(jnp.all(jnp.isfinite(logits)))
    assert bool(jnp.all(jnp.isfinite(type_logit)))
    assert bool(jnp.all(jnp.isfinite(all_ans_embs)))

    # numeric check against a pure-JAX reference of the same bf16-weight math
    r_gen, r_logits, r_type, r_all = _ref_forward(params, v, q)

    def _maxdiff(a, b):
        return float(jnp.max(jnp.abs(a - b)))

    assert _maxdiff(gen_embs, r_gen) < 2e-2
    assert _maxdiff(logits, r_logits) < 2e-2
    assert _maxdiff(type_logit, r_type) < 2e-2
    assert _maxdiff(all_ans_embs, r_all) < 2e-2
    print("KERNEL_OK")
</pallas_src>

<mosaic_0001>
module attributes {stable_mosaic.version = 11 : i64} {
  func.func @_emb_proj_kernel(%arg0: memref<16x300xf32, #tpu.memory_space<vmem>>, %arg1: memref<300x1024xbf16, #tpu.memory_space<vmem>>, %arg2: memref<1x1024xf32, #tpu.memory_space<vmem>>, %arg3: memref<1x1024xf32, #tpu.memory_space<vmem>>, %arg4: memref<1x1024xf32, #tpu.memory_space<vmem>>, %arg5: memref<1024x300xbf16, #tpu.memory_space<vmem>>, %arg6: memref<1x300xf32, #tpu.memory_space<vmem>>, %arg7: memref<16x300xf32, #tpu.memory_space<vmem>>) attributes {dimension_semantics = [], scalar_prefetch = 0 : i64, scratch_operands = 0 : i64, tpu.core_type = #tpu.core_type<tc>} {
    %c0 = arith.constant 0 : index
    %c0_0 = arith.constant 0 : index
    %0 = vector.load %arg0[%c0, %c0_0] : memref<16x300xf32, #tpu.memory_space<vmem>>, vector<16x300xf32>
    %1 = arith.truncf %0 : vector<16x300xf32> to vector<16x300xbf16>
    %c0_1 = arith.constant 0 : index
    %c0_2 = arith.constant 0 : index
    %2 = vector.load %arg1[%c0_1, %c0_2] : memref<300x1024xbf16, #tpu.memory_space<vmem>>, vector<300x1024xbf16>
    %cst = arith.constant dense<0.000000e+00> : vector<16x1024xf32>
    %3 = tpu.matmul %1, %2, %cst {dimension_numbers = #tpu.dot_dimension_numbers<[1], [0], [0], [1], [0, 0, 1, 1], [], []>} : vector<16x300xbf16>, vector<300x1024xbf16>, vector<16x1024xf32> -> vector<16x1024xf32>
    %c0_3 = arith.constant 0 : index
    %c0_4 = arith.constant 0 : index
    %4 = vector.load %arg2[%c0_3, %c0_4] : memref<1x1024xf32, #tpu.memory_space<vmem>>, vector<1x1024xf32>
    %5 = vector.broadcast %4 : vector<1x1024xf32> to vector<16x1024xf32>
    %6 = arith.addf %3, %5 : vector<16x1024xf32>
    %cst_5 = arith.constant 5.000000e-01 : f32
    %7 = vector.broadcast %cst_5 : f32 to vector<16x1024xf32>
    %8 = arith.mulf %6, %7 : vector<16x1024xf32>
    %cst_6 = arith.constant 0.707106769 : f32
    %9 = vector.broadcast %cst_6 : f32 to vector<16x1024xf32>
    %10 = arith.mulf %6, %9 : vector<16x1024xf32>
    %11 = math.absf %10 : vector<16x1024xf32>
    %cst_7 = arith.constant 0.327591091 : f32
    %12 = vector.broadcast %cst_7 : f32 to vector<16x1024xf32>
    %13 = arith.mulf %12, %11 : vector<16x1024xf32>
    %cst_8 = arith.constant 1.000000e+00 : f32
    %14 = vector.broadcast %cst_8 : f32 to vector<16x1024xf32>
    %15 = arith.addf %14, %13 : vector<16x1024xf32>
    %cst_9 = arith.constant 1.000000e+00 : f32
    %16 = vector.broadcast %cst_9 : f32 to vector<16x1024xf32>
    %17 = arith.divf %16, %15 : vector<16x1024xf32>
    %cst_10 = arith.constant 1.06140542 : f32
    %18 = vector.broadcast %cst_10 : f32 to vector<16x1024xf32>
    %19 = arith.mulf %18, %17 : vector<16x1024xf32>
    %cst_11 = arith.constant -1.45315206 : f32
    %20 = vector.broadcast %cst_11 : f32 to vector<16x1024xf32>
    %21 = arith.addf %19, %20 : vector<16x1024xf32>
    %22 = arith.mulf %21, %17 : vector<16x1024xf32>
    %cst_12 = arith.constant 1.42141378 : f32
    %23 = vector.broadcast %cst_12 : f32 to vector<16x1024xf32>
    %24 = arith.addf %22, %23 : vector<16x1024xf32>
    %25 = arith.mulf %24, %17 : vector<16x1024xf32>
    %cst_13 = arith.constant -0.284496725 : f32
    %26 = vector.broadcast %cst_13 : f32 to vector<16x1024xf32>
    %27 = arith.addf %25, %26 : vector<16x1024xf32>
    %28 = arith.mulf %27, %17 : vector<16x1024xf32>
    %cst_14 = arith.constant 0.254829586 : f32
    %29 = vector.broadcast %cst_14 : f32 to vector<16x1024xf32>
    %30 = arith.addf %28, %29 : vector<16x1024xf32>
    %31 = arith.mulf %30, %17 : vector<16x1024xf32>
    %cst_15 = arith.constant 0.000000e+00 : f32
    %32 = vector.broadcast %cst_15 : f32 to vector<16x1024xf32>
    %33 = arith.subf %32, %11 : vector<16x1024xf32>
    %34 = arith.mulf %33, %11 : vector<16x1024xf32>
    %35 = math.exp %34 : vector<16x1024xf32>
    %36 = arith.mulf %31, %35 : vector<16x1024xf32>
    %cst_16 = arith.constant 1.000000e+00 : f32
    %37 = vector.broadcast %cst_16 : f32 to vector<16x1024xf32>
    %38 = arith.subf %37, %36 : vector<16x1024xf32>
    %cst_17 = arith.constant 0.000000e+00 : f32
    %39 = vector.broadcast %cst_17 : f32 to vector<16x1024xf32>
    %40 = arith.cmpf oge, %10, %39 : vector<16x1024xf32>
    %cst_18 = arith.constant 0.000000e+00 : f32
    %41 = vector.broadcast %cst_18 : f32 to vector<16x1024xf32>
    %42 = arith.subf %41, %38 : vector<16x1024xf32>
    %43 = arith.select %40, %38, %42 : vector<16x1024xi1>, vector<16x1024xf32>
    %cst_19 = arith.constant 1.000000e+00 : f32
    %44 = vector.broadcast %cst_19 : f32 to vector<16x1024xf32>
    %45 = arith.addf %44, %43 : vector<16x1024xf32>
    %46 = arith.mulf %8, %45 : vector<16x1024xf32>
    %c0_20 = arith.constant 0 : index
    %c0_21 = arith.constant 0 : index
    %47 = vector.load %arg3[%c0_20, %c0_21] : memref<1x1024xf32, #tpu.memory_space<vmem>>, vector<1x1024xf32>
    %c0_22 = arith.constant 0 : index
    %c0_23 = arith.constant 0 : index
    %48 = vector.load %arg4[%c0_22, %c0_23] : memref<1x1024xf32, #tpu.memory_space<vmem>>, vector<1x1024xf32>
    %cst_24 = arith.constant dense<0.000000e+00> : vector<16xf32>
    %49 = vector.multi_reduction <add>, %46, %cst_24 [1] : vector<16x1024xf32> to vector<16xf32>
    %50 = vector.shape_cast %49 : vector<16xf32> to vector<16x1xf32>
    %cst_25 = arith.constant 1.024000e+03 : f32
    %51 = vector.broadcast %cst_25 : f32 to vector<16x1xf32>
    %52 = arith.divf %50, %51 : vector<16x1xf32>
    %53 = vector.broadcast %52 : vector<16x1xf32> to vector<16x1024xf32>
    %54 = arith.subf %46, %53 : vector<16x1024xf32>
    %55 = vector.broadcast %52 : vector<16x1xf32> to vector<16x1024xf32>
    %56 = arith.subf %46, %55 : vector<16x1024xf32>
    %57 = arith.mulf %54, %56 : vector<16x1024xf32>
    %cst_26 = arith.constant dense<0.000000e+00> : vector<16xf32>
    %58 = vector.multi_reduction <add>, %57, %cst_26 [1] : vector<16x1024xf32> to vector<16xf32>
    %59 = vector.shape_cast %58 : vector<16xf32> to vector<16x1xf32>
    %cst_27 = arith.constant 1.024000e+03 : f32
    %60 = vector.broadcast %cst_27 : f32 to vector<16x1xf32>
    %61 = arith.divf %59, %60 : vector<16x1xf32>
    %62 = vector.broadcast %52 : vector<16x1xf32> to vector<16x1024xf32>
    %63 = arith.subf %46, %62 : vector<16x1024xf32>
    %cst_28 = arith.constant 9.99999996E-13 : f32
    %64 = vector.broadcast %cst_28 : f32 to vector<16x1xf32>
    %65 = arith.addf %61, %64 : vector<16x1xf32>
    %66 = math.sqrt %65 : vector<16x1xf32>
    %67 = vector.broadcast %66 : vector<16x1xf32> to vector<16x1024xf32>
    %68 = arith.divf %63, %67 : vector<16x1024xf32>
    %69 = vector.broadcast %47 : vector<1x1024xf32> to vector<16x1024xf32>
    %70 = arith.mulf %69, %68 : vector<16x1024xf32>
    %71 = vector.broadcast %48 : vector<1x1024xf32> to vector<16x1024xf32>
    %72 = arith.addf %70, %71 : vector<16x1024xf32>
    %73 = arith.truncf %72 : vector<16x1024xf32> to vector<16x1024xbf16>
    %c0_29 = arith.constant 0 : index
    %c0_30 = arith.constant 0 : index
    %74 = vector.load %arg5[%c0_29, %c0_30] : memref<1024x300xbf16, #tpu.memory_space<vmem>>, vector<1024x300xbf16>
    %cst_31 = arith.constant dense<0.000000e+00> : vector<16x300xf32>
    %75 = tpu.matmul %73, %74, %cst_31 {dimension_numbers = #tpu.dot_dimension_numbers<[1], [0], [0], [1], [0, 0, 1, 1], [], []>} : vector<16x1024xbf16>, vector<1024x300xbf16>, vector<16x300xf32> -> vector<16x300xf32>
    %c0_32 = arith.constant 0 : index
    %c0_33 = arith.constant 0 : index
    %76 = vector.load %arg6[%c0_32, %c0_33] : memref<1x300xf32, #tpu.memory_space<vmem>>, vector<1x300xf32>
    %77 = vector.broadcast %76 : vector<1x300xf32> to vector<16x300xf32>
    %78 = arith.addf %75, %77 : vector<16x300xf32>
    %c0_34 = arith.constant 0 : index
    %c0_35 = arith.constant 0 : index
    %79 = vector.load %arg7[%c0_34, %c0_35] : memref<16x300xf32, #tpu.memory_space<vmem>>, vector<16x300xf32>
    tpu.vector_store %arg7[%c0_34, %c0_35], %78 {strides = array<i32>} : memref<16x300xf32, #tpu.memory_space<vmem>>, vector<16x300xf32>,
    return
  }
}

</mosaic_0001>

<bundles_post_ra>
// kernel: tpu_custom_call.1
= control target key start
LH: loop header
LB: loop body
LE: loop exit
PB: predicated region body
PF: predicated region fallthrough
CT: control target
= control target key end

     0   :  { %v4518_v6 = vmov 0   ;;  %vm987_vm0 = vcmask 1045504   ;;  %vm983_vm1 = vcmask 359424   ;;  %s6355_s0 = inlined_call_operand.vmem [shape: f32[16,300], index: 0, kind: input, shape index: {}]   ;;  %s6356_s1 = inlined_call_operand.vmem [shape: bf16[300,1024], index: 1, kind: input, shape index: {}]   ;;  %s6357_s2 = inlined_call_operand.vmem [shape: f32[1,1024], index: 2, kind: input, shape index: {}]   ;;  %s6358_s3 = inlined_call_operand.vmem [shape: f32[1,1024], index: 3, kind: input, shape index: {}]   ;;  %s6359_s4 = inlined_call_operand.vmem [shape: f32[1,1024], index: 4, kind: input, shape index: {}]   ;;  %s6360_s5 = inlined_call_operand.vmem [shape: bf16[1024,300], index: 5, kind: input, shape index: {}]   ;;  %s6361_s6 = inlined_call_operand.vmem [shape: f32[1,300], index: 6, kind: input, shape index: {}]   ;;  %s6362_s7 = inlined_call_operand.hbm [shape: f32[16,300], index: 7, kind: output, shape index: {}]  }
   0x1   :  { %v37_v0 = vld [vmem:[%s6356_s1] sm:$0xff]  ;;  %1087 = vmatprep.mubr.bf16.mxu0 %v4518_v6  ;;  %v29_v28 = vld [vmem:[%s6355_s0 + $0x8] sm:$0xff]  ;;  %v39_v38 = vld [vmem:[%s6356_s1 + $0x10] sm:$0xff] }
   0x2   :  { %v41_v1 = vld [vmem:[%s6356_s1 + $0x20] sm:$0xff]  ;;  %v43_v39 = vld [vmem:[%s6356_s1 + $0x30] sm:$0xff]  ;;  %v33_v42 = vld [vmem:[%s6355_s0 + $0x28] sm:$0xff] }
   0x3   :  { %v45_v2 = vld [vmem:[%s6356_s1 + $0x40] sm:$0xff]  ;;  %v3675_v3 = vcombine.high %v37_v0, %v41_v1  ;;  %v3674_v4 = vcombine.low %v37_v0, %v41_v1  ;;  %v30_v41 = vld [vmem:[%s6355_s0 + $0x10] sm:$0xff]  ;;  %v3679_v46 = vcombine.high %v39_v38, %v43_v39  ;;  %v3678_v52 = vcombine.low %v39_v38, %v43_v39 }
   0x4   :  { %v49_v5 = vld [vmem:[%s6356_s1 + $0x60] sm:$0xff]  ;;  %v47_v47 = vld [vmem:[%s6356_s1 + $0x50] sm:$0xff]  ;;  %v4652_v50 = vpack.c.bf16 %v33_v42, %v30_v41 }
   0x5   :  { %v3683_v7 = vcombine.high %v45_v2, %v49_v5  ;;  %v53_v8 = vld [vmem:[%s6356_s1 + $0x80] sm:$0xff]  ;;  %1012 = vmatprep.subr.bf16.mxu1 %v3675_v3  ;;  %v3682_v10 = vcombine.low %v45_v2, %v49_v5  ;;  %v51_v48 = vld [vmem:[%s6356_s1 + $0x70] sm:$0xff] }
   0x6   :  { %v57_v9 = vld [vmem:[%s6356_s1 + $0xa0] sm:$0xff]  ;;  %1013 = vmatpush1.bf16.msra.mxu1 %v3674_v4  ;;  %v3687_v55 = vcombine.high %v47_v47, %v51_v48  ;;  %v55_v56 = vld [vmem:[%s6356_s1 + $0x90] sm:$0xff]  ;;  %v3686_v60 = vcombine.low %v47_v47, %v51_v48 }
   0x7   :  { %1014 = vmatprep.subr.bf16.mxu1 %v3683_v7  ;;  %v3691_v11 = vcombine.high %v53_v8, %v57_v9  ;;  %v61_v12 = vld [vmem:[%s6356_s1 + $0xc0] sm:$0xff]  ;;  %v3690_v14 = vcombine.low %v53_v8, %v57_v9  ;;  %v59_v57 = vld [vmem:[%s6356_s1 + $0xb0] sm:$0xff] }
   0x8   :  { %v65_v13 = vld [vmem:[%s6356_s1 + $0xe0] sm:$0xff]  ;;  %v3695_v63 = vcombine.high %v55_v56, %v59_v57  ;;  %v63_v0 = vld [vmem:[%s6356_s1 + $0xd0] sm:$0xff]  ;;  %v3694_v4 = vcombine.low %v55_v56, %v59_v57 }
   0x9   :  { %v3699_v15 = vcombine.high %v61_v12, %v65_v13  ;;  %v165_v16 = vld [vmem:[%s6356_s1 + $0x400] sm:$0xff]  ;;  %v3698_v24 = vcombine.low %v61_v12, %v65_v13  ;;  %v67_v1 = vld [vmem:[%s6356_s1 + $0xf0] sm:$0xff] }
   0xa   :  { %1015 = vmatpush1.bf16.msra.mxu1 %v3682_v10  ;;  %v169_v17 = vld [vmem:[%s6356_s1 + $0x420] sm:$0xff]  ;;  %v3703_v8 = vcombine.high %v63_v0, %v67_v1  ;;  %v71_v9 = vld [vmem:[%s6356_s1 + $0x110] sm:$0xff]  ;;  %v3702_v13 = vcombine.low %v63_v0, %v67_v1 }
   0xb   :  { %1016 = vmatprep.subr.bf16.mxu1 %v3691_v11  ;;  %v69_v18 = vld [vmem:[%s6356_s1 + $0x100] sm:$0xff]  ;;  %v3803_v20 = vcombine.high %v165_v16, %v169_v17  ;;  %v3802_v21 = vcombine.low %v165_v16, %v169_v17  ;;  %v75_v10 = vld [vmem:[%s6356_s1 + $0x130] sm:$0xff] }
   0xc   :  { %v73_v19 = vld [vmem:[%s6356_s1 + $0x120] sm:$0xff]  ;;  %v3711_v16 = vcombine.high %v71_v9, %v75_v10  ;;  %v79_v17 = vld [vmem:[%s6356_s1 + $0x150] sm:$0xff] }
   0xd   :  { %v173_v22 = vld [vmem:[%s6356_s1 + $0x440] sm:$0xff]  ;;  %1055 = vmatprep.subr.bf16.mxu0 %v3803_v20  ;;  %v3707_v29 = vcombine.high %v69_v18, %v73_v19  ;;  %v3706_v37 = vcombine.low %v69_v18, %v73_v19  ;;  %v83_v18 = vld [vmem:[%s6356_s1 + $0x170] sm:$0xff] }
   0xe   :  { %v177_v23 = vld [vmem:[%s6356_s1 + $0x460] sm:$0xff]  ;;  %1017 = vmatpush1.bf16.msra.mxu1 %v3690_v14  ;;  %1056 = vmatpush1.bf16.msra.mxu0 %v3802_v21  ;;  %v3710_v21 = vcombine.low %v71_v9, %v75_v10  ;;  %v103_v41 = vld [vmem:[%s6356_s1 + $0x210] sm:$0xff]  ;;  %v46_v9 = vld [vmem:[%s6356_s1 + $0x48] sm:$0xff] }
   0xf   :  { %v3811_v25 = vcombine.high %v173_v22, %v177_v23  ;;  %v181_v26 = vld [vmem:[%s6356_s1 + $0x480] sm:$0xff]  ;;  %1018 = vmatprep.subr.bf16.mxu1 %v3699_v15  ;;  %v3810_v30 = vcombine.low %v173_v22, %v177_v23  ;;  %v107_v42 = vld [vmem:[%s6356_s1 + $0x230] sm:$0xff]  ;;  %v50_v10 = vld [vmem:[%s6356_s1 + $0x68] sm:$0xff] }
  0x10   :  { %v185_v27 = vld [vmem:[%s6356_s1 + $0x4a0] sm:$0x33]  ;;  %v3742_v57 = vcombine.low %v103_v41, %v107_v42 }
  0x11   :  { %v32_v31 = vld [vmem:[%s6355_s0 + $0x20] sm:$0xff]  ;;  %1057 = vmatprep.subr.bf16.mxu0 %v3811_v25  ;;  %v3819_v34 = vcombine.high %v181_v26, %v185_v27  ;;  %v3818_v36 = vcombine.low %v181_v26, %v185_v27  ;;  %v87_v25 = vld [vmem:[%s6356_s1 + $0x190] sm:$0xff] }
  0x12   :  { %v77_v32 = vld [vmem:[%s6356_s1 + $0x140] sm:$0xff]  ;;  %v4623_v35 = vpack.c.bf16 %v32_v31, %v29_v28  ;;  %1019 = vmatpush1.bf16.msra.mxu1 %v3698_v24  ;;  %1058 = vmatpush1.bf16.msra.mxu0 %v3810_v30  ;;  %v3719_v24 = vcombine.high %v79_v17, %v83_v18  ;;  %v91_v26 = vld [vmem:[%s6356_s1 + $0x1b0] sm:$0xff] }
  0x13   :  { %v81_v33 = vld [vmem:[%s6356_s1 + $0x160] sm:$0xff]  ;;  %1020 = vmatprep.subr.bf16.mxu1 %v3707_v29  ;;  %3826 = vmatprep.subr.msk.bf16.mxu0 %vm987_vm0, %v3819_v34  ;;  %v989_v45 = vsel %vm987_vm0, %v3818_v36, 0  ;;  %v3718_v29 = vcombine.low %v79_v17, %v83_v18  ;;  %v99_v34 = vld [vmem:[%s6356_s1 + $0x1f0] sm:$0xff]  ;;  %v54_v18 = vld [vmem:[%s6356_s1 + $0x88] sm:$0xff] }
  0x14   :  { %1044 = vmatprep.mubr.bf16.mxu1 %v4623_v35  ;;  %v3715_v40 = vcombine.high %v77_v32, %v81_v33  ;;  %v85_v43 = vld [vmem:[%s6356_s1 + $0x180] sm:$0xff]  ;;  %v3714_v49 = vcombine.low %v77_v32, %v81_v33  ;;  %v3727_v32 = vcombine.high %v87_v25, %v91_v26  ;;  %v95_v33 = vld [vmem:[%s6356_s1 + $0x1d0] sm:$0xff] }
  0x15   :  { %v89_v44 = vld [vmem:[%s6356_s1 + $0x1a0] sm:$0xff]  ;;  %v3734_v48 = vcombine.low %v95_v33, %v99_v34 }
  0x16   :  { %1021 = vmatpush1.bf16.msra.mxu1 %v3706_v37  ;;  %v3723_v51 = vcombine.high %v85_v43, %v89_v44  ;;  %1060 = vmatpush1.bf16.msra.mxu0 %v989_v45  ;;  %v93_v53 = vld [vmem:[%s6356_s1 + $0x1c0] sm:$0xff]  ;;  %v3722_v58 = vcombine.low %v85_v43, %v89_v44  ;;  %v3735_v43 = vcombine.high %v95_v33, %v99_v34  ;;  %v70_v34 = vld [vmem:[%s6356_s1 + $0x108] sm:$0xff] }
  0x17   :  { %1022 = vmatprep.subr.bf16.mxu1 %v3715_v40  ;;  %v97_v54 = vld [vmem:[%s6356_s1 + $0x1e0] sm:$0xff]  ;;  %1184 = vmatprep.subr.bf16.mxu0 %v3679_v46  ;;  %v3726_v40 = vcombine.low %v87_v25, %v91_v26  ;;  %v3684_v25 = vcombine.low %v46_v9, %v50_v10  ;;  %v62_v26 = vld [vmem:[%s6356_s1 + $0xc8] sm:$0xff] }
  0x18   :  { %v3731_v59 = vcombine.high %v93_v53, %v97_v54  ;;  %v101_v61 = vld [vmem:[%s6356_s1 + $0x200] sm:$0xff]  ;;  %v3730_v2 = vcombine.low %v93_v53, %v97_v54 }
  0x19   :  { %3827 = vmatmul.mubr.msk.bf16.vlgmr.msra.gmra.mrb[0].mxu0 %vm983_vm1, %v4652_v50  ;;  %v105_v62 = vld [vmem:[%s6356_s1 + $0x220] sm:$0xff] }
  0x1a   :  { %1023 = vmatpush1.bf16.msra.mxu1 %v3714_v49  ;;  %1185 = vmatpush1.bf16.msra.mxu0 %v3678_v52  ;;  %v3739_v3 = vcombine.high %v101_v61, %v105_v62  ;;  %v109_v5 = vld [vmem:[%s6356_s1 + $0x240] sm:$0xff]  ;;  %v3738_v11 = vcombine.low %v101_v61, %v105_v62  ;;  %v111_v49 = vld [vmem:[%s6356_s1 + $0x250] sm:$0xff]  ;;  %v3743_v52 = vcombine.high %v103_v41, %v107_v42  ;;  %v38_v62 = vld [vmem:[%s6356_s1 + $0x8] sm:$0xff] }
  0x1b   :  { %1024 = vmatprep.subr.bf16.mxu1 %v3723_v51  ;;  %1186 = vmatprep.subr.bf16.mxu0 %v3687_v55  ;;  %v113_v7 = vld [vmem:[%s6356_s1 + $0x260] sm:$0xff]  ;;  %v115_v51 = vld [vmem:[%s6356_s1 + $0x270] sm:$0xff] }
  0x1c   :  { %1216 = vmatprep.mubr.bf16.mxu0 %v4623_v35  ;;  %v3747_v12 = vcombine.high %v109_v5, %v113_v7  ;;  %v117_v14 = vld [vmem:[%s6356_s1 + $0x280] sm:$0xff]  ;;  %v3746_v19 = vcombine.low %v109_v5, %v113_v7  ;;  %v3750_v1 = vcombine.low %v111_v49, %v115_v51  ;;  %v31_v5 = vld [vmem:[%s6355_s0 + $0x18] sm:$0xff] }
  0x1d   :  { %v121_v15 = vld [vmem:[%s6356_s1 + $0x2a0] sm:$0xff] }
  0x1e   :  { %1025 = vmatpush1.bf16.msra.mxu1 %v3722_v58  ;;  %1187 = vmatpush1.bf16.msra.mxu0 %v3686_v60  ;;  %v3755_v20 = vcombine.high %v117_v14, %v121_v15  ;;  %v125_v22 = vld [vmem:[%s6356_s1 + $0x2c0] sm:$0xff]  ;;  %v3754_v27 = vcombine.low %v117_v14, %v121_v15  ;;  %v119_v58 = vld [vmem:[%s6356_s1 + $0x290] sm:$0xff]  ;;  %v3751_v60 = vcombine.high %v111_v49, %v115_v51 }
  0x1f   :  { %1026 = vmatprep.subr.bf16.mxu1 %v3731_v59  ;;  %1188 = vmatprep.subr.bf16.mxu0 %v3695_v63  ;;  %v129_v23 = vld [vmem:[%s6356_s1 + $0x2e0] sm:$0xff]  ;;  %v123_v59 = vld [vmem:[%s6356_s1 + $0x2b0] sm:$0xff]  ;;  %v42_v63 = vld [vmem:[%s6356_s1 + $0x28] sm:$0xff] }
  0x20   :  { %v3763_v28 = vcombine.high %v125_v22, %v129_v23  ;;  %v133_v30 = vld [vmem:[%s6356_s1 + $0x300] sm:$0xff]  ;;  %v3762_v36 = vcombine.low %v125_v22, %v129_v23  ;;  %v3759_v7 = vcombine.high %v119_v58, %v123_v59  ;;  %v139_v14 = vld [vmem:[%s6356_s1 + $0x330] sm:$0xff]  ;;  %v3676_v17 = vcombine.low %v38_v62, %v42_v63 }
  0x21   :  { %v137_v31 = vld [vmem:[%s6356_s1 + $0x320] sm:$0xff]  ;;  %v143_v22 = vld [vmem:[%s6356_s1 + $0x350] sm:$0xff] }
  0x22   :  { %1027 = vmatpush1.bf16.msra.mxu1 %v3730_v2  ;;  %1189 = vmatpush1.bf16.msra.mxu0 %v3694_v4  ;;  %v141_v37 = vld [vmem:[%s6356_s1 + $0x340] sm:$0xff]  ;;  %v3771_v38 = vcombine.high %v133_v30, %v137_v31  ;;  %v3770_v44 = vcombine.low %v133_v30, %v137_v31  ;;  %v127_v2 = vld [vmem:[%s6356_s1 + $0x2d0] sm:$0xff] }
  0x23   :  { %1028 = vmatprep.subr.bf16.mxu1 %v3739_v3  ;;  %1190 = vmatprep.subr.bf16.mxu0 %v3703_v8  ;;  %v145_v39 = vld [vmem:[%s6356_s1 + $0x360] sm:$0xff]  ;;  %v131_v3 = vld [vmem:[%s6356_s1 + $0x2f0] sm:$0xff] }
  0x24   :  { %v149_v45 = vld [vmem:[%s6356_s1 + $0x380] sm:$0xff]  ;;  %v3779_v47 = vcombine.high %v141_v37, %v145_v39  ;;  %v3778_v53 = vcombine.low %v141_v37, %v145_v39  ;;  %v3767_v15 = vcombine.high %v127_v2, %v131_v3  ;;  %v147_v23 = vld [vmem:[%s6356_s1 + $0x370] sm:$0xff] }
  0x25   :  { %v153_v46 = vld [vmem:[%s6356_s1 + $0x3a0] sm:$0xff]  ;;  %v151_v30 = vld [vmem:[%s6356_s1 + $0x390] sm:$0xff] }
  0x26   :  { %1029 = vmatpush1.bf16.msra.mxu1 %v3738_v11  ;;  %1191 = vmatpush1.bf16.msra.mxu0 %v3702_v13  ;;  %v157_v54 = vld [vmem:[%s6356_s1 + $0x3c0] sm:$0xff]  ;;  %v3787_v56 = vcombine.high %v149_v45, %v153_v46  ;;  %v3786_v61 = vcombine.low %v149_v45, %v153_v46  ;;  %v3677_v11 = vcombine.high %v38_v62, %v42_v63  ;;  %v135_v13 = vld [vmem:[%s6356_s1 + $0x310] sm:$0xff] }
  0x27   :  { %1030 = vmatprep.subr.bf16.mxu1 %v3747_v12  ;;  %1192 = vmatprep.subr.bf16.mxu0 %v3711_v16  ;;  %v161_v55 = vld [vmem:[%s6356_s1 + $0x3e0] sm:$0xff]  ;;  %v3758_v12 = vcombine.low %v119_v58, %v123_v59  ;;  %v155_v31 = vld [vmem:[%s6356_s1 + $0x3b0] sm:$0xff] }
  0x28   :  { %v3795_v0 = vcombine.high %v157_v54, %v161_v55  ;;  %v28_v4 = vld [vmem:[%s6355_s0] sm:$0xff]  ;;  %v3794_v8 = vcombine.low %v157_v54, %v161_v55  ;;  %v159_v39 = vld [vmem:[%s6356_s1 + $0x3d0] sm:$0xff]  ;;  %v3791_v41 = vcombine.high %v151_v30, %v155_v31  ;;  %v3790_v46 = vcombine.low %v151_v30, %v155_v31  ;;  %v142_v30 = vld [vmem:[%s6356_s1 + $0x348] sm:$0xff] }
  0x29   :  { %v4795_v16 = vpack.c.bf16 %v31_v5, %v28_v4  ;;  %v102_v4 = vld [vmem:[%s6356_s1 + $0x208] sm:$0xff] }
  0x2a   :  { %1031 = vmatpush1.bf16.msra.mxu1 %v3746_v19  ;;  %1193 = vmatpush1.bf16.msra.mxu0 %v3710_v21  ;;  %v58_v19 = vld [vmem:[%s6356_s1 + $0xa8] sm:$0xff]  ;;  %v3766_v21 = vcombine.low %v127_v2, %v131_v3 }
  0x2b   :  { %1032 = vmatprep.subr.bf16.mxu1 %v3755_v20  ;;  %1194 = vmatprep.subr.bf16.mxu0 %v3719_v24  ;;  %v3685_v20 = vcombine.high %v46_v9, %v50_v10  ;;  %v3775_v24 = vcombine.high %v135_v13, %v139_v14  ;;  %v3692_v33 = vcombine.low %v54_v18, %v58_v19  ;;  %v106_v5 = vld [vmem:[%s6356_s1 + $0x228] sm:$0xff] }
  0x2c   :  { %v146_v31 = vld [vmem:[%s6356_s1 + $0x368] sm:$0xff] }
  0x2e   :  { %1033 = vmatpush1.bf16.msra.mxu1 %v3754_v27  ;;  %1195 = vmatpush1.bf16.msra.mxu0 %v3718_v29  ;;  %v66_v27 = vld [vmem:[%s6356_s1 + $0xe8] sm:$0xff]  ;;  %v3774_v29 = vcombine.low %v135_v13, %v139_v14  ;;  %v3741_v14 = vcombine.high %v102_v4, %v106_v5 }
  0x2f   :  { %1034 = vmatprep.subr.bf16.mxu1 %v3763_v28  ;;  %1196 = vmatprep.subr.bf16.mxu0 %v3727_v32  ;;  %v3693_v28 = vcombine.high %v54_v18, %v58_v19  ;;  %v3783_v32 = vcombine.high %v143_v22, %v147_v23  ;;  %v3701_v37 = vcombine.high %v62_v26, %v66_v27  ;;  %v114_v13 = vld [vmem:[%s6356_s1 + $0x268] sm:$0xff] }
  0x30   :  { %v3700_v42 = vcombine.low %v62_v26, %v66_v27  ;;  %v118_v18 = vld [vmem:[%s6356_s1 + $0x288] sm:$0xff] }
  0x31   :  { %v122_v19 = vld [vmem:[%s6356_s1 + $0x2a8] sm:$0xff] }
  0x32   :  { %1035 = vmatpush1.bf16.msra.mxu1 %v3762_v36  ;;  %1197 = vmatpush1.bf16.msra.mxu0 %v3726_v40  ;;  %v74_v36 = vld [vmem:[%s6356_s1 + $0x128] sm:$0xff]  ;;  %v163_v40 = vld [vmem:[%s6356_s1 + $0x3f0] sm:$0xff] }
  0x33   :  { %1036 = vmatprep.subr.bf16.mxu1 %v3771_v38  ;;  %1198 = vmatprep.subr.bf16.mxu0 %v3735_v43  ;;  %v3782_v38 = vcombine.low %v143_v22, %v147_v23  ;;  %v78_v43 = vld [vmem:[%s6356_s1 + $0x148] sm:$0xff]  ;;  %v3709_v45 = vcombine.high %v70_v34, %v74_v36  ;;  %v3799_v49 = vcombine.high %v159_v39, %v163_v40 }
  0x34   :  { %v3708_v51 = vcombine.low %v70_v34, %v74_v36  ;;  %v3798_v55 = vcombine.low %v159_v39, %v163_v40  ;;  %v126_v22 = vld [vmem:[%s6356_s1 + $0x2c8] sm:$0xff] }
  0x35   :  { %v130_v23 = vld [vmem:[%s6356_s1 + $0x2e8] sm:$0xff] }
  0x36   :  { %1037 = vmatpush1.bf16.msra.mxu1 %v3770_v44  ;;  %1199 = vmatpush1.bf16.msra.mxu0 %v3734_v48  ;;  %v82_v44 = vld [vmem:[%s6356_s1 + $0x168] sm:$0xff]  ;;  %v171_v48 = vld [vmem:[%s6356_s1 + $0x430] sm:$0xff] }
  0x37   :  { %1038 = vmatprep.subr.bf16.mxu1 %v3779_v47  ;;  %1200 = vmatprep.subr.bf16.mxu0 %v3743_v52  ;;  %v167_v47 = vld [vmem:[%s6356_s1 + $0x410] sm:$0xff]  ;;  %v86_v52 = vld [vmem:[%s6356_s1 + $0x188] sm:$0xff]  ;;  %v3717_v54 = vcombine.high %v78_v43, %v82_v44  ;;  %v3716_v59 = vcombine.low %v78_v43, %v82_v44 }
  0x38   :  { %v3807_v58 = vcombine.high %v167_v47, %v171_v48  ;;  %v3806_v63 = vcombine.low %v167_v47, %v171_v48  ;;  %v134_v26 = vld [vmem:[%s6356_s1 + $0x308] sm:$0xff] }
  0x39   :  { %v138_v27 = vld [vmem:[%s6356_s1 + $0x328] sm:$0xff] }
  0x3a   :  { %1039 = vmatpush1.bf16.msra.mxu1 %v3778_v53  ;;  %1201 = vmatpush1.bf16.msra.mxu0 %v3742_v57  ;;  %v90_v53 = vld [vmem:[%s6356_s1 + $0x1a8] sm:$0xff]  ;;  %v179_v57 = vld [vmem:[%s6356_s1 + $0x470] sm:$0xff] }
  0x3b   :  { %1040 = vmatprep.subr.bf16.mxu1 %v3787_v56  ;;  %1202 = vmatprep.subr.bf16.mxu0 %v3751_v60  ;;  %v175_v56 = vld [vmem:[%s6356_s1 + $0x450] sm:$0xff]  ;;  %v94_v60 = vld [vmem:[%s6356_s1 + $0x1c8] sm:$0xff]  ;;  %v3725_v62 = vcombine.high %v86_v52, %v90_v53  ;;  %v3724_v3 = vcombine.low %v86_v52, %v90_v53 }
  0x3c   :  { %v3815_v2 = vcombine.high %v175_v56, %v179_v57  ;;  %v150_v34 = vld [vmem:[%s6356_s1 + $0x388] sm:$0xff] }
  0x3d   :  { %v154_v36 = vld [vmem:[%s6356_s1 + $0x3a8] sm:$0xff] }
  0x3e   :  { %1041 = vmatpush1.bf16.msra.mxu1 %v3786_v61  ;;  %1203 = vmatpush1.bf16.msra.mxu0 %v3750_v1  ;;  %v98_v61 = vld [vmem:[%s6356_s1 + $0x1e8] sm:$0xff]  ;;  %v187_v1 = vld [vmem:[%s6356_s1 + $0x4b0] sm:$0x33] }
  0x3f   :  { %1042 = vmatprep.subr.bf16.mxu1 %v3795_v0  ;;  %1204 = vmatprep.subr.bf16.mxu0 %v3759_v7  ;;  %v183_v0 = vld [vmem:[%s6356_s1 + $0x490] sm:$0xff]  ;;  %v3733_v7 = vcombine.high %v94_v60, %v98_v61  ;;  %v158_v39 = vld [vmem:[%s6356_s1 + $0x3c8] sm:$0xff] }
  0x40   :  { %v3823_v9 = vcombine.high %v183_v0, %v187_v1  ;;  %v3822_v10 = vcombine.low %v183_v0, %v187_v1  ;;  %v162_v40 = vld [vmem:[%s6356_s1 + $0x3e8] sm:$0xff] }
  0x41   :  { %v166_v43 = vld [vmem:[%s6356_s1 + $0x408] sm:$0xff] }
  0x42   :  { %1043 = vmatpush1.bf16.msra.mxu1 %v3794_v8  ;;  %1205 = vmatpush1.bf16.msra.mxu0 %v3758_v12  ;;  %v3814_v8 = vcombine.low %v175_v56, %v179_v57  ;;  %v110_v12 = vld [vmem:[%s6356_s1 + $0x248] sm:$0xff]  ;;  %v40_v56 = vld [vmem:[%s6356_s1 + $0x18] sm:$0xff] }
  0x43   :  { %1098 = vmatprep.subr.bf16.mxu1 %v3677_v11  ;;  %1206 = vmatprep.subr.bf16.mxu0 %v3767_v15  ;;  %v3732_v11 = vcombine.low %v94_v60, %v98_v61  ;;  %v1001_v15 = vsel %vm987_vm0, %v3822_v10, 0  ;;  %v170_v44 = vld [vmem:[%s6356_s1 + $0x428] sm:$0xff]  ;;  %v44_v57 = vld [vmem:[%s6356_s1 + $0x38] sm:$0xff] }
  0x44   :  { %v174_v47 = vld [vmem:[%s6356_s1 + $0x448] sm:$0xff]  ;;  %v48_v60 = vld [vmem:[%s6356_s1 + $0x58] sm:$0xff] }
  0x45   :  { %1045 = vmatmul.mubr.bf16.vlgmr.msra.gmra.mrb[0].mxu1 %v4795_v16  ;;  %v178_v48 = vld [vmem:[%s6356_s1 + $0x468] sm:$0xff] }
  0x46   :  { %1099 = vmatpush1.bf16.msra.mxu1 %v3676_v17  ;;  %1130 = vmatprep.mubr.bf16.mxu1 %v4623_v35  ;;  %v3740_v17 = vcombine.low %v102_v4, %v106_v5  ;;  %v182_v52 = vld [vmem:[%s6356_s1 + $0x488] sm:$0xff] }
  0x47   :  { %1100 = vmatprep.subr.bf16.mxu1 %v3685_v20  ;;  %1207 = vmatpush1.bf16.msra.mxu0 %v3766_v21  ;;  %v3749_v20 = vcombine.high %v110_v12, %v114_v13  ;;  %v3748_v21 = vcombine.low %v110_v12, %v114_v13  ;;  %v186_v53 = vld [vmem:[%s6356_s1 + $0x4a8] sm:$0x33] }
  0x48   :  { %1208 = vmatprep.subr.bf16.mxu0 %v3775_v24  ;;  %v3757_v24 = vcombine.high %v118_v18, %v122_v19 }
  0x4a   :  { %1101 = vmatpush1.bf16.msra.mxu1 %v3684_v25  ;;  %v3756_v25 = vcombine.low %v118_v18, %v122_v19 }
  0x4b   :  { %1102 = vmatprep.subr.bf16.mxu1 %v3693_v28  ;;  %1209 = vmatpush1.bf16.msra.mxu0 %v3774_v29  ;;  %v3765_v28 = vcombine.high %v126_v22, %v130_v23  ;;  %v3764_v29 = vcombine.low %v126_v22, %v130_v23 }
  0x4c   :  { %1210 = vmatprep.subr.bf16.mxu0 %v3783_v32  ;;  %v3773_v32 = vcombine.high %v134_v26, %v138_v27 }
  0x4e   :  { %1103 = vmatpush1.bf16.msra.mxu1 %v3692_v33  ;;  %v3772_v33 = vcombine.low %v134_v26, %v138_v27 }
  0x4f   :  { %1104 = vmatprep.subr.bf16.mxu1 %v3701_v37  ;;  %1211 = vmatpush1.bf16.msra.mxu0 %v3782_v38  ;;  %v3781_v37 = vcombine.high %v142_v30, %v146_v31  ;;  %v3780_v38 = vcombine.low %v142_v30, %v146_v31 }
  0x50   :  { %1212 = vmatprep.subr.bf16.mxu0 %v3791_v41  ;;  %v3789_v41 = vcombine.high %v150_v34, %v154_v36 }
  0x52   :  { %1105 = vmatpush1.bf16.msra.mxu1 %v3700_v42  ;;  %v3788_v42 = vcombine.low %v150_v34, %v154_v36 }
  0x53   :  { %1106 = vmatprep.subr.bf16.mxu1 %v3709_v45  ;;  %1213 = vmatpush1.bf16.msra.mxu0 %v3790_v46  ;;  %v3797_v45 = vcombine.high %v158_v39, %v162_v40  ;;  %v3796_v46 = vcombine.low %v158_v39, %v162_v40 }
  0x54   :  { %1214 = vmatprep.subr.bf16.mxu0 %v3799_v49  ;;  %v3805_v49 = vcombine.high %v166_v43, %v170_v44 }
  0x56   :  { %1107 = vmatpush1.bf16.msra.mxu1 %v3708_v51  ;;  %v3804_v51 = vcombine.low %v166_v43, %v170_v44 }
  0x57   :  { %1108 = vmatprep.subr.bf16.mxu1 %v3717_v54  ;;  %1215 = vmatpush1.bf16.msra.mxu0 %v3798_v55  ;;  %v3813_v54 = vcombine.high %v174_v47, %v178_v48  ;;  %v3812_v55 = vcombine.low %v174_v47, %v178_v48 }
  0x58   :  { %1227 = vmatprep.subr.bf16.mxu0 %v3807_v58  ;;  %v3821_v58 = vcombine.high %v182_v52, %v186_v53 }
  0x5a   :  { %1109 = vmatpush1.bf16.msra.mxu1 %v3716_v59  ;;  %1217 = vmatmul.mubr.bf16.vlgmr.msra.gmra.mrb[4].mxu0 %v4795_v16  ;;  %v3820_v59 = vcombine.low %v182_v52, %v186_v53 }
  0x5b   :  { %1110 = vmatprep.subr.bf16.mxu1 %v3725_v62  ;;  %1228 = vmatpush1.bf16.msra.mxu0 %v3806_v63  ;;  %v3681_v62 = vcombine.high %v40_v56, %v44_v57  ;;  %v52_v63 = vld [vmem:[%s6356_s1 + $0x78] sm:$0xff] }
  0x5c   :  { %1229 = vmatprep.subr.bf16.mxu0 %v3815_v2  ;;  %1259 = vmatprep.mubr.bf16.mxu0 %v4518_v6  ;;  %v995_v61 = vsel %vm987_vm0, %v3820_v59, 0 }
  0x5e   :  { %1111 = vmatpush1.bf16.msra.mxu1 %v3724_v3 }
  0x5f   :  { %1112 = vmatprep.subr.bf16.mxu1 %v3733_v7  ;;  %1230 = vmatpush1.bf16.msra.mxu0 %v3814_v8 }
  0x60   :  { %3830 = vmatprep.subr.msk.bf16.mxu0 %vm987_vm0, %v3823_v9 }
  0x62   :  { %1113 = vmatpush1.bf16.msra.mxu1 %v3732_v11 }
  0x63   :  { %1114 = vmatprep.subr.bf16.mxu1 %v3741_v14  ;;  %1232 = vmatpush1.bf16.msra.mxu0 %v1001_v15 }
  0x66   :  { %1115 = vmatpush1.bf16.msra.mxu1 %v3740_v17  ;;  %3831 = vmatmul.mubr.msk.bf16.vlgmr.msra.gmra.mrb[4].mxu0 %vm983_vm1, %v4652_v50 }
  0x67   :  { %1116 = vmatprep.subr.bf16.mxu1 %v3749_v20 }
  0x6a   :  { %1117 = vmatpush1.bf16.msra.mxu1 %v3748_v21 }
  0x6b   :  { %1118 = vmatprep.subr.bf16.mxu1 %v3757_v24 }
  0x6e   :  { %1119 = vmatpush1.bf16.msra.mxu1 %v3756_v25 }
  0x6f   :  { %1120 = vmatprep.subr.bf16.mxu1 %v3765_v28 }
  0x72   :  { %1121 = vmatpush1.bf16.msra.mxu1 %v3764_v29 }
  0x73   :  { %1122 = vmatprep.subr.bf16.mxu1 %v3773_v32 }
  0x76   :  { %1123 = vmatpush1.bf16.msra.mxu1 %v3772_v33 }
  0x77   :  { %1124 = vmatprep.subr.bf16.mxu1 %v3781_v37 }
  0x7a   :  { %1125 = vmatpush1.bf16.msra.mxu1 %v3780_v38 }
  0x7b   :  { %1126 = vmatprep.subr.bf16.mxu1 %v3789_v41 }
  0x7e   :  { %1127 = vmatpush1.bf16.msra.mxu1 %v3788_v42 }
  0x7f   :  { %1128 = vmatprep.subr.bf16.mxu1 %v3797_v45 }
  0x82   :  { %1129 = vmatpush1.bf16.msra.mxu1 %v3796_v46 }
  0x83   :  { %1141 = vmatprep.subr.bf16.mxu1 %v3805_v49 }
  0x85   :  { %1131 = vmatmul.mubr.bf16.vlgmr.msra.gmra.mrb[4].mxu1 %v4795_v16 }
  0x86   :  { %1142 = vmatpush1.bf16.msra.mxu1 %v3804_v51  ;;  %1173 = vmatprep.mubr.bf16.mxu1 %v4518_v6 }
  0x87   :  { %1143 = vmatprep.subr.bf16.mxu1 %v3813_v54 }
  0x8a   :  { %1144 = vmatpush1.bf16.msra.mxu1 %v3812_v55 }
  0x8b   :  { %3828 = vmatprep.subr.msk.bf16.mxu1 %vm987_vm0, %v3821_v58 }
  0x8c   :  { %12 = vsyncpa [#allocation3], 0  ;;  %v3680_v0 = vcombine.low %v40_v56, %v44_v57  ;;  %v3689_v1 = vcombine.high %v48_v60, %v52_v63  ;;  %v56_v2 = vld [vmem:[%s6356_s1 + $0x98] sm:$0xff]  ;;  %v3688_v4 = vcombine.low %v48_v60, %v52_v63 }
  0x8d   :  { %v60_v3 = vld [vmem:[%s6356_s1 + $0xb8] sm:$0xff] }
  0x8e   :  { %1146 = vmatpush1.bf16.msra.mxu1 %v995_v61  ;;  %v3697_v5 = vcombine.high %v56_v2, %v60_v3  ;;  %v64_v7 = vld [vmem:[%s6356_s1 + $0xd8] sm:$0xff]  ;;  %v3696_v9 = vcombine.low %v56_v2, %v60_v3 }
  0x8f   :  { %1270 = vmatprep.subr.bf16.mxu1 %v3681_v62  ;;  %v68_v8 = vld [vmem:[%s6356_s1 + $0xf8] sm:$0xff] }
  0x90   :  { %v3705_v10 = vcombine.high %v64_v7, %v68_v8  ;;  %v72_v11 = vld [vmem:[%s6356_s1 + $0x118] sm:$0xff]  ;;  %v3704_v12 = vcombine.low %v64_v7, %v68_v8 }
  0x91   :  { %3829 = vmatmul.mubr.msk.bf16.vlgmr.msra.gmra.mrb[4].mxu1 %vm983_vm1, %v4652_v50  ;;  %v80_v14 = vld [vmem:[%s6356_s1 + $0x158] sm:$0xff] }
  0x92   :  { %1271 = vmatpush1.bf16.msra.mxu1 %v3680_v0  ;;  %1302 = vmatprep.mubr.bf16.mxu1 %v4623_v35  ;;  %v76_v35 = vld [vmem:[%s6356_s1 + $0x138] sm:$0xff] }
  0x93   :  { %1272 = vmatprep.subr.bf16.mxu1 %v3689_v1  ;;  %v3713_v13 = vcombine.high %v72_v11, %v76_v35  ;;  %v84_v15 = vld [vmem:[%s6356_s1 + $0x178] sm:$0xff]  ;;  %v3712_v17 = vcombine.low %v72_v11, %v76_v35 }
  0x94   :  { %v3721_v18 = vcombine.high %v80_v14, %v84_v15  ;;  %v88_v19 = vld [vmem:[%s6356_s1 + $0x198] sm:$0xff]  ;;  %v3720_v21 = vcombine.low %v80_v14, %v84_v15  ;;  %v191_v14 = vlaneseq }
  0x95   :  { %v92_v20 = vld [vmem:[%s6356_s1 + $0x1b8] sm:$0xff] }
  0x96   :  { %1273 = vmatpush1.bf16.msra.mxu1 %v3688_v4  ;;  %v3729_v22 = vcombine.high %v88_v19, %v92_v20  ;;  %v96_v23 = vld [vmem:[%s6356_s1 + $0x1d8] sm:$0xff]  ;;  %v3728_v25 = vcombine.low %v88_v19, %v92_v20  ;;  %v5070_v15 = vshrl.u32 %v191_v14, 7 }
  0x97   :  { %1274 = vmatprep.subr.bf16.mxu1 %v3697_v5  ;;  %v100_v24 = vld [vmem:[%s6356_s1 + $0x1f8] sm:$0xff] }
  0x98   :  { %v3737_v26 = vcombine.high %v96_v23, %v100_v24  ;;  %v104_v27 = vld [vmem:[%s6356_s1 + $0x218] sm:$0xff]  ;;  %v3736_v29 = vcombine.low %v96_v23, %v100_v24 }
  0x99   :  { %v108_v28 = vld [vmem:[%s6356_s1 + $0x238] sm:$0xff] }
  0x9a   :  { %1275 = vmatpush1.bf16.msra.mxu1 %v3696_v9  ;;  %v3745_v30 = vcombine.high %v104_v27, %v108_v28  ;;  %v112_v31 = vld [vmem:[%s6356_s1 + $0x258] sm:$0xff]  ;;  %v3744_v33 = vcombine.low %v104_v27, %v108_v28 }
  0x9b   :  { %1276 = vmatprep.subr.bf16.mxu1 %v3705_v10  ;;  %v116_v32 = vld [vmem:[%s6356_s1 + $0x278] sm:$0xff] }
  0x9c   :  { %v3753_v34 = vcombine.high %v112_v31, %v116_v32  ;;  %v120_v36 = vld [vmem:[%s6356_s1 + $0x298] sm:$0xff]  ;;  %v3752_v38 = vcombine.low %v112_v31, %v116_v32 }
  0x9d   :  { %v124_v37 = vld [vmem:[%s6356_s1 + $0x2b8] sm:$0xff] }
  0x9e   :  { %1277 = vmatpush1.bf16.msra.mxu1 %v3704_v12  ;;  %v3761_v39 = vcombine.high %v120_v36, %v124_v37  ;;  %v128_v40 = vld [vmem:[%s6356_s1 + $0x2d8] sm:$0xff]  ;;  %v3760_v42 = vcombine.low %v120_v36, %v124_v37 }
  0x9f   :  { %1278 = vmatprep.subr.bf16.mxu1 %v3713_v13  ;;  %v132_v41 = vld [vmem:[%s6356_s1 + $0x2f8] sm:$0xff] }
  0xa0   :  { %v3769_v43 = vcombine.high %v128_v40, %v132_v41  ;;  %v136_v44 = vld [vmem:[%s6356_s1 + $0x318] sm:$0xff]  ;;  %v3768_v46 = vcombine.low %v128_v40, %v132_v41 }
  0xa1   :  { %v140_v45 = vld [vmem:[%s6356_s1 + $0x338] sm:$0xff] }
  0xa2   :  { %1279 = vmatpush1.bf16.msra.mxu1 %v3712_v17  ;;  %v3777_v47 = vcombine.high %v136_v44, %v140_v45  ;;  %v144_v48 = vld [vmem:[%s6356_s1 + $0x358] sm:$0xff]  ;;  %v3776_v51 = vcombine.low %v136_v44, %v140_v45  ;;  %v5078_v17 = vld [vmem:[%s6357_s2] sm:$0xff] }
  0xa3   :  { %1280 = vmatprep.subr.bf16.mxu1 %v3721_v18  ;;  %v148_v49 = vld [vmem:[%s6356_s1 + $0x378] sm:$0xff]  ;;  %v5081_v18 = vsub.s32 1, %v5070_v15 }
  0xa4   :  { %v3785_v52 = vcombine.high %v144_v48, %v148_v49  ;;  %v152_v53 = vld [vmem:[%s6356_s1 + $0x398] sm:$0xff]  ;;  %v3784_v55 = vcombine.low %v144_v48, %v148_v49 }
  0xa5   :  { %v156_v54 = vld [vmem:[%s6356_s1 + $0x3b8] sm:$0xff]  ;;  %6384 = vst [vmem:[#allocation6_spill] sm:$0xff] %v5081_v18  ;;  %v198_v19 = vrot.slane %v5078_v17, %v5081_v18 }
  0xa6   :  { %1281 = vmatpush1.bf16.msra.mxu1 %v3720_v21  ;;  %v3793_v56 = vcombine.high %v152_v53, %v156_v54  ;;  %v160_v57 = vld [vmem:[%s6356_s1 + $0x3d8] sm:$0xff]  ;;  %v3792_v59 = vcombine.low %v152_v53, %v156_v54 }
  0xa7   :  { %1282 = vmatprep.subr.bf16.mxu1 %v3729_v22  ;;  %v164_v58 = vld [vmem:[%s6356_s1 + $0x3f8] sm:$0xff] }
  0xa8   :  { %v3801_v60 = vcombine.high %v160_v57, %v164_v58  ;;  %v168_v61 = vld [vmem:[%s6356_s1 + $0x418] sm:$0xff]  ;;  %v3800_v63 = vcombine.low %v160_v57, %v164_v58 }
  0xa9   :  { %v172_v62 = vld [vmem:[%s6356_s1 + $0x438] sm:$0xff] }
  0xaa   :  { %1283 = vmatpush1.bf16.msra.mxu1 %v3728_v25  ;;  %v3809_v0 = vcombine.high %v168_v61, %v172_v62  ;;  %v176_v1 = vld [vmem:[%s6356_s1 + $0x458] sm:$0xff]  ;;  %v3808_v3 = vcombine.low %v168_v61, %v172_v62 }
  0xab   :  { %1284 = vmatprep.subr.bf16.mxu1 %v3737_v26  ;;  %v180_v2 = vld [vmem:[%s6356_s1 + $0x478] sm:$0xff] }
  0xac   :  { %v3817_v4 = vcombine.high %v176_v1, %v180_v2  ;;  %v184_v5 = vld [vmem:[%s6356_s1 + $0x498] sm:$0xff]  ;;  %v3816_v8 = vcombine.low %v176_v1, %v180_v2 }
  0xad   :  { %v188_v7 = vld [vmem:[%s6356_s1 + $0x4b8] sm:$0x33] }
  0xae   :  { %1285 = vmatpush1.bf16.msra.mxu1 %v3736_v29  ;;  %v3825_v9 = vcombine.high %v184_v5, %v188_v7  ;;  %v3824_v10 = vcombine.low %v184_v5, %v188_v7 }
  0xaf   :  { %1286 = vmatprep.subr.bf16.mxu1 %v3745_v30 }
  0xb0   :  { %v1007_v11 = vsel %vm987_vm0, %v3824_v10, 0 }
  0xb2   :  { %1287 = vmatpush1.bf16.msra.mxu1 %v3744_v33 }
  0xb3   :  { %1288 = vmatprep.subr.bf16.mxu1 %v3753_v34 }
  0xb6   :  { %1289 = vmatpush1.bf16.msra.mxu1 %v3752_v38 }
  0xb7   :  { %1290 = vmatprep.subr.bf16.mxu1 %v3761_v39 }
  0xba   :  { %1291 = vmatpush1.bf16.msra.mxu1 %v3760_v42 }
  0xbb   :  { %1292 = vmatprep.subr.bf16.mxu1 %v3769_v43 }
  0xbe   :  { %1293 = vmatpush1.bf16.msra.mxu1 %v3768_v46 }
  0xbf   :  { %1294 = vmatprep.subr.bf16.mxu1 %v3777_v47 }
  0xc2   :  { %1295 = vmatpush1.bf16.msra.mxu1 %v3776_v51 }
  0xc3   :  { %1296 = vmatprep.subr.bf16.mxu1 %v3785_v52  ;;  %v5126_v52 = vsub.s32 4, %v5070_v15 }
  0xc5   :  { %6385 = vst [vmem:[#allocation7_spill] sm:$0xff] %v5126_v52 }
  0xc6   :  { %1297 = vmatpush1.bf16.msra.mxu1 %v3784_v55 }
  0xc7   :  { %1298 = vmatprep.subr.bf16.mxu1 %v3793_v56 }
  0xca   :  { %1299 = vmatpush1.bf16.msra.mxu1 %v3792_v59  ;;  %v210_v59 = vrot.slane %v5078_v17, %v5126_v52 }
  0xcb   :  { %1300 = vmatprep.subr.bf16.mxu1 %v3801_v60  ;;  %v5131_v60 = vsub.s32 5, %v5070_v15 }
  0xcd   :  { %6386 = vst [vmem:[#allocation8_spill] sm:$0xff] %v5131_v60 }
  0xce   :  { %1301 = vmatpush1.bf16.msra.mxu1 %v3800_v63 }
  0xcf   :  { %1313 = vmatprep.subr.bf16.mxu1 %v3809_v0  ;;  %v214_v0 = vrot.slane %v5078_v17, %v5131_v60 }
  0xd1   :  { %1303 = vmatmul.mubr.bf16.vlgmr.msra.gmra.mrb[8].mxu1 %v4795_v16 }
  0xd2   :  { %1314 = vmatpush1.bf16.msra.mxu1 %v3808_v3  ;;  %1345 = vmatprep.mubr.bf16.mxu1 %v4518_v6  ;;  %v5073_v6 = vsub.s32 0, %v5070_v15  ;;  %v5144_v3 = vsub.s32 2, %v5070_v15 }
  0xd3   :  { %1315 = vmatprep.subr.bf16.mxu1 %v3817_v4 }
  0xd4   :  { %6383 = vst [vmem:[#allocation5_spill] sm:$0xff] %v5073_v6  ;;  %6387 = vst [vmem:[#allocation9_spill] sm:$0xff] %v5144_v3 }
  0xd6   :  { %1316 = vmatpush1.bf16.msra.mxu1 %v3816_v8 }
  0xd7   :  { %3832 = vmatprep.subr.msk.bf16.mxu1 %vm987_vm0, %v3825_v9 }
  0xda   :  { %1318 = vmatpush1.bf16.msra.mxu1 %v1007_v11  ;;  %v202_v11 = vrot.slane %v5078_v17, %v5144_v3 }
  0xdd   :  { %3833 = vmatmul.mubr.msk.bf16.vlgmr.msra.gmra.mrb[8].mxu1 %vm983_vm1, %v4652_v50  ;;  %v194_v50 = vrot.slane %v5078_v17, %v5073_v6 }
  0xec   :  { %v1089_v35 = vpop.f32.mrb[0].mxu0 }
  0xed   :  { %v1091_v12 = vpop.f32.mrb[1].mxu0 }
  0xee   :  { %v1093_v13 = vpop.f32.mrb[2].mxu0 }
  0xef   :  { %v1095_v16 = vpop.f32.mrb[3].mxu0 }
 0x118   :  { %v1046_v20 = vpop.f32.mrb[0].mxu1 }
 0x119   :  { %v1047_v21 = vadd.f32 %v1046_v20, %v194_v50  ;;  %v1048_v22 = vpop.f32.mrb[1].mxu1 }
 0x11a   :  { %v1049_v23 = vadd.f32 %v1048_v22, %v198_v19  ;;  %v1050_v24 = vpop.f32.mrb[2].mxu1 }
 0x11b   :  { %v1051_v25 = vadd.f32 %v1050_v24, %v194_v50  ;;  %v5087_v26 = vadd.f32 %v1089_v35, %v1047_v21  ;;  %v1052_v27 = vpop.f32.mrb[3].mxu1 }
 0x11c   :  { %v1053_v28 = vadd.f32 %v1052_v27, %v198_v19  ;;  %v5089_v29 = vadd.f32 %v1091_v12, %v1049_v23 }
 0x11d   :  { %v5091_v30 = vadd.f32 %v1093_v13, %v1051_v25  ;;  %v5098_v37 = vmul.f32 0.70710677, %v5087_v26  ;;  %v5164_v13 = vsub.s32 3, %v5070_v15 }
 0x11e   :  { %v5093_v31 = vadd.f32 %v1095_v16, %v1053_v28  ;;  %v5101_v38 = vmul.f32 0.70710677, %v5089_v29 }
 0x11f   :  { %v5104_v39 = vand.u32 2147483647, %v5098_v37  ;;  %v5111_v42 = vmul.f32 0.70710677, %v5091_v30  ;;  %6389 = vst [vmem:[#allocation11_spill] sm:$0xff] %v5164_v13  ;;  %v206_v23 = vrot.slane %v5078_v17, %v5164_v13  ;;  %vm1708_vm2 = vcmp.ge.f32.partialorder %v5098_v37, 0.0 }
 0x120   :  { %v5107_v40 = vand.u32 2147483647, %v5101_v38  ;;  %v5115_v44 = vmul.f32 0.70710677, %v5093_v31  ;;  %vm1709_vm3 = vcmp.ge.f32.partialorder %v5101_v38, 0.0 }
 0x121   :  { %v1404_v41 = vmul.f32 0.3275911, %v5104_v39  ;;  %v5118_v46 = vand.u32 2147483647, %v5111_v42  ;;  %v1612_v25 = vsub.f32 0.0, %v5104_v39  ;;  %vm1716_vm4 = vcmp.ge.f32.partialorder %v5111_v42, 0.0 }
 0x122   :  { %v1405_v43 = vmul.f32 0.3275911, %v5107_v40  ;;  %v5121_v48 = vand.u32 2147483647, %v5115_v44  ;;  %vm1717_vm5 = vcmp.ge.f32.partialorder %v5115_v44, 0.0 }
 0x123   :  { %v1420_v45 = vadd.f32 1.0, %v1404_v41  ;;  %v1412_v49 = vmul.f32 0.3275911, %v5118_v46 }
 0x124   :  { %v1421_v47 = vadd.f32 1.0, %v1405_v43  ;;  %v1413_v51 = vmul.f32 0.3275911, %v5121_v48 }
 0x125   :  { %4422 = vrcp.f32 %v1420_v45  ;;  %v1428_v53 = vadd.f32 1.0, %v1412_v49  ;;  %v1613_v49 = vsub.f32 0.0, %v5107_v40 }
 0x126   :  { %4424 = vrcp.f32 %v1421_v47  ;;  %v1429_v55 = vadd.f32 1.0, %v1413_v51 }
 0x127   :  { %4426 = vrcp.f32 %v1428_v53 }
 0x128   :  { %4428 = vrcp.f32 %v1429_v55 }
 0x12f   :  { %v5133_v61 = vpop.eup %4422 }
 0x130   :  { %v5135_v62 = vpop.eup %4424  ;;  %v1468_v1 = vmul.f32 1.0614054, %v5133_v61 }
 0x131   :  { %v1469_v2 = vmul.f32 1.0614054, %v5135_v62  ;;  %v5151_v8 = vpop.eup %4426 }
 0x132   :  { %v1484_v7 = vadd.f32 -1.4531521, %v1468_v1  ;;  %v5153_v10 = vpop.eup %4428  ;;  %v1476_v14 = vmul.f32 1.0614054, %v5151_v8 }
 0x133   :  { %v1485_v9 = vadd.f32 -1.4531521, %v1469_v2  ;;  %v1477_v19 = vmul.f32 1.0614054, %v5153_v10 }
 0x134   :  { %v1500_v16 = vmul.f32 %v5133_v61, %v1484_v7  ;;  %v1492_v27 = vadd.f32 -1.4531521, %v1476_v14 }
 0x135   :  { %v1501_v50 = vmul.f32 %v5135_v62, %v1485_v9  ;;  %v1620_v9 = vsub.f32 0.0, %v5118_v46 }
 0x136   :  { %v1516_v24 = vadd.f32 1.4214138, %v1500_v16  ;;  %v1508_v55 = vmul.f32 %v5151_v8, %v1492_v27 }
 0x137   :  { %v1517_v28 = vadd.f32 1.4214138, %v1501_v50 }
 0x138   :  { %v1532_v53 = vmul.f32 %v5133_v61, %v1516_v24  ;;  %v1524_v50 = vadd.f32 1.4214138, %v1508_v55 }
 0x139   :  { %v1261_v32 = vpop.f32.mrb[4].mxu0 }
 0x13a   :  { %v1263_v33 = vpop.f32.mrb[5].mxu0  ;;  %v5137_v63 = vadd.f32 %v1261_v32, %v210_v59  ;;  %v1493_v32 = vadd.f32 -1.4531521, %v1477_v19  ;;  %v1548_v16 = vadd.f32 -0.28449672, %v1532_v53 }
 0x13b   :  { %v1265_v34 = vpop.f32.mrb[6].mxu0  ;;  %v5149_v5 = vadd.f32 %v1263_v33, %v214_v0 }
 0x13c   :  { %v5095_v36 = vpop.f32.mrb[7].mxu0  ;;  %v5147_v4 = vmul.f32 0.70710677, %v5137_v63  ;;  %v5179_v33 = vadd.f32 %v1265_v34, %v210_v59  ;;  %v1533_v34 = vmul.f32 %v5135_v62, %v1517_v28  ;;  %v1509_v59 = vmul.f32 %v5153_v10, %v1493_v32 }
 0x13d   :  { %v5161_v12 = vmul.f32 0.70710677, %v5149_v5  ;;  %v5213_v19 = vadd.f32 %v5095_v36, %v214_v0  ;;  %v1636_v32 = vmul.f32 %v1620_v9, %v5118_v46  ;;  %v1564_v0 = vmul.f32 %v5133_v61, %v1548_v16 }
 0x13e   :  { %v5158_v35 = vand.u32 2147483647, %v5147_v4  ;;  %vm1712_vm6 = vcmp.ge.f32.partialorder %v5147_v4, 0.0 }
 0x13f   :  { %6388 = vst [vmem:[#allocation10_spill] sm:$0xff] %v5161_v12  ;;  %v5174_v22 = vand.u32 2147483647, %v5161_v12  ;;  %v1580_v9 = vadd.f32 0.2548296, %v1564_v0 }
 0x140   :  { %v1408_v21 = vmul.f32 0.3275911, %v5158_v35 }
 0x141   :  { %v1409_v47 = vmul.f32 0.3275911, %v5174_v22 }
 0x142   :  { %v1424_v45 = vadd.f32 1.0, %v1408_v21  ;;  %v1549_v21 = vadd.f32 -0.28449672, %v1533_v34 }
 0x143   :  { %v1425_v7 = vadd.f32 1.0, %v1409_v47  ;;  %v5232_v47 = vmul.f32 0.70710677, %v5213_v19 }
 0x144   :  { %4430 = vrcp.f32 %v1424_v45  ;;  %v1565_v46 = vmul.f32 %v5135_v62, %v1549_v21 }
 0x145   :  { %4432 = vrcp.f32 %v1425_v7  ;;  %6390 = vst [vmem:[#allocation12_spill] sm:$0xff] %v5232_v47  ;;  %v5246_v16 = vand.u32 2147483647, %v5232_v47 }
 0x146   :  { %v1581_v60 = vadd.f32 0.2548296, %v1565_v46 }
 0x147   :  { %v1417_v0 = vmul.f32 0.3275911, %v5246_v16 }
 0x164   :  { %v1175_v54 = vpop.f32.mrb[4].mxu1 }
 0x165   :  { %v1177_v56 = vpop.f32.mrb[5].mxu1  ;;  %v5170_v20 = vadd.f32 %v1175_v54, %v202_v11  ;;  %v1628_v54 = vmul.f32 %v1612_v25, %v5104_v39  ;;  %v1629_v39 = vmul.f32 %v1613_v49, %v5107_v40  ;;  %v1525_v40 = vadd.f32 1.4214138, %v1509_v59 }
 0x166   :  { %v1179_v57 = vpop.f32.mrb[6].mxu1  ;;  %v5188_v51 = vadd.f32 %v1177_v56, %v206_v23  ;;  %v1540_v49 = vmul.f32 %v5151_v8, %v1524_v50 }
 0x167   :  { %v1181_v58 = vpop.f32.mrb[7].mxu1  ;;  %v5182_v41 = vmul.f32 0.70710677, %v5170_v20  ;;  %v5184_v43 = vadd.f32 %v1179_v57, %v202_v11  ;;  %v5198_v57 = vmul.f32 0.70710677, %v5179_v33  ;;  %v1621_v11 = vsub.f32 0.0, %v5121_v48 }
 0x168   :  { %v5195_v1 = vadd.f32 %v1181_v58, %v206_v23  ;;  %v5210_v58 = vmul.f32 0.70710677, %v5188_v51  ;;  %v1644_v14 = vmul.f32 1.442695, %v1628_v54  ;;  %v1646_v28 = vmul.f32 1.442695, %v1629_v39  ;;  %v5243_v39 = vpop.eup %4430 }
 0x169   :  { %v5201_v2 = vand.u32 2147483647, %v5182_v41  ;;  %v5204_v56 = vmul.f32 0.70710677, %v5184_v43  ;;  %v5219_v24 = vand.u32 2147483647, %v5198_v57  ;;  %v1637_v45 = vmul.f32 %v1621_v11, %v5121_v48  ;;  %v5250_v3 = vpop.eup %4432 }
 0x16a   :  { %v5216_v23 = vmul.f32 0.70710677, %v5195_v1  ;;  %v5227_v36 = vand.u32 2147483647, %v5210_v58  ;;  %4434 = vpow2.f32 %v1644_v14  ;;  %v1541_v55 = vmul.f32 %v5153_v10, %v1525_v40 }
 0x16b   :  { %v1406_v25 = vmul.f32 0.3275911, %v5201_v2  ;;  %v5223_v27 = vand.u32 2147483647, %v5204_v56  ;;  %v1416_v54 = vmul.f32 0.3275911, %v5219_v24  ;;  %4436 = vpow2.f32 %v1646_v28 }
 0x16c   :  { %v5236_v53 = vand.u32 2147483647, %v5216_v23  ;;  %v1660_v48 = vmul.f32 1.442695, %v1636_v32  ;;  %v1407_v7 = vmul.f32 0.3275911, %v5227_v36 }
 0x16d   :  { %v1422_v34 = vadd.f32 1.0, %v1406_v25  ;;  %v1414_v59 = vmul.f32 0.3275911, %v5223_v27  ;;  %v1662_v11 = vmul.f32 1.442695, %v1637_v45  ;;  %v1432_v21 = vadd.f32 1.0, %v1416_v54 }
 0x16e   :  { %v1556_v14 = vadd.f32 -0.28449672, %v1540_v49  ;;  %v1415_v50 = vmul.f32 0.3275911, %v5236_v53  ;;  %v1557_v40 = vadd.f32 -0.28449672, %v1541_v55  ;;  %v1596_v45 = vmul.f32 %v5133_v61, %v1580_v9 }
 0x16f   :  { %4438 = vrcp.f32 %v1422_v34  ;;  %v1430_v25 = vadd.f32 1.0, %v1414_v59  ;;  %v1423_v28 = vadd.f32 1.0, %v1407_v7  ;;  %v1472_v32 = vmul.f32 1.0614054, %v5243_v39 }
 0x170   :  { %4440 = vpow2.f32 %v1660_v48  ;;  %v1572_v49 = vmul.f32 %v5151_v8, %v1556_v14  ;;  %v1431_v13 = vadd.f32 1.0, %v1415_v50  ;;  %v1597_v54 = vmul.f32 %v5135_v62, %v1581_v60 }
 0x171   :  { %4442 = vpow2.f32 %v1662_v11  ;;  %v1573_v46 = vmul.f32 %v5153_v10, %v1557_v40  ;;  %v1488_v34 = vadd.f32 -1.4531521, %v1472_v32  ;;  %v1473_v59 = vmul.f32 1.0614054, %v5250_v3 }
 0x172   :  { %4444 = vrcp.f32 %v1432_v21  ;;  %v1433_v48 = vadd.f32 1.0, %v1417_v0  ;;  %v1588_v6 = vadd.f32 0.2548296, %v1572_v49  ;;  %v1356_v32 = vmul.f32 0.5, %v5087_v26 }
 0x173   :  { %4446 = vrcp.f32 %v1430_v25  ;;  %v1589_v9 = vadd.f32 0.2548296, %v1573_v46  ;;  %v1504_v14 = vmul.f32 %v5243_v39, %v1488_v34  ;;  %v1489_v50 = vadd.f32 -1.4531521, %v1473_v59 }
 0x174   :  { %v4435_v55 = vpop.eup %4434  ;;  %4448 = vrcp.f32 %v1423_v28  ;;  %v1604_v40 = vmul.f32 %v5151_v8, %v1588_v6  ;;  %v1616_v25 = vsub.f32 0.0, %v5158_v35  ;;  %v5265_v0 = vmul.f32 0.5, %v5089_v29 }
 0x175   :  { %v4437_v7 = vpop.eup %4436  ;;  %v1676_v11 = vmul.f32 %v4435_v55, %v1596_v45  ;;  %4450 = vrcp.f32 %v1431_v13  ;;  %v1605_v45 = vmul.f32 %v5153_v10, %v1589_v9  ;;  %v1520_v46 = vadd.f32 1.4214138, %v1504_v14 }
 0x176   :  { %v1677_v61 = vmul.f32 %v4437_v7, %v1597_v54  ;;  %4452 = vrcp.f32 %v1433_v48  ;;  %v1505_v6 = vmul.f32 %v5250_v3, %v1489_v50  ;;  %v5277_v26 = vmul.f32 0.5, %v5091_v30 }
 0x177   :  { %v1692_v62 = vsub.f32 1.0, %v1676_v11  ;;  %v1617_v29 = vsub.f32 0.0, %v5174_v22  ;;  %v5281_v10 = vsub.s32 6, %v5070_v15  ;;  %v1632_v48 = vmul.f32 %v1616_v25, %v5158_v35 }
 0x178   :  { %v1693_v13 = vsub.f32 1.0, %v1677_v61  ;;  %v5287_v7 = vsub.s32 7, %v5070_v15  ;;  %v5290_v61 = vmul.f32 0.5, %v5093_v31  ;;  %v1536_v52 = vmul.f32 %v5243_v39, %v1520_v46 }
 0x179   :  { %v5259_v21 = vpop.eup %4438  ;;  %6391 = vst [vmem:[#allocation13_spill] sm:$0xff] %v5281_v10  ;;  %v1724_v34 = vsub.f32 0.0, %v1692_v62  ;;  %v1633_v35 = vmul.f32 %v1617_v29, %v5174_v22  ;;  %v5302_v31 = vrot.slane %v5078_v17, %v5281_v10  ;;  %v1624_v38 = vsub.f32 0.0, %v5219_v24 }
 0x17a   :  { %v4441_v60 = vpop.eup %4440  ;;  %v1470_v54 = vmul.f32 1.0614054, %v5259_v21  ;;  %6392 = vst [vmem:[#allocation14_spill] sm:$0xff] %v5287_v7  ;;  %v1725_v11 = vsub.f32 0.0, %v1693_v13  ;;  %v1615_v44 = vsub.f32 0.0, %v5227_v36  ;;  %vm1710_vm7 = vcmp.ge.f32.partialorder %v5182_v41, 0.0 }
 0x17b   :  { %v4443_v28 = vpop.eup %4442  ;;  %v1684_v59 = vmul.f32 %v4441_v60, %v1604_v40  ;;  %v1521_v60 = vadd.f32 1.4214138, %v1505_v6  ;;  %v1740_v40 = vsel %vm1708_vm2, %v1692_v62, %v1724_v34  ;;  %v1552_v34 = vadd.f32 -0.28449672, %v1536_v52 }
 0x17c   :  { %v5268_v49 = vpop.eup %4444  ;;  %v1685_v30 = vmul.f32 %v4443_v28, %v1605_v45  ;;  %v1486_v50 = vadd.f32 -1.4531521, %v1470_v54  ;;  %v1652_v28 = vmul.f32 1.442695, %v1632_v48  ;;  %v5309_v45 = vrot.slane %v5078_v17, %v5287_v7 }
 0x17d   :  { %v5273_v8 = vpop.eup %4446  ;;  %v1480_v9 = vmul.f32 1.0614054, %v5268_v49  ;;  %v1700_v25 = vsub.f32 1.0, %v1684_v59  ;;  %v1741_v22 = vsel %vm1709_vm3, %v1693_v13, %v1725_v11  ;;  %v1537_v59 = vmul.f32 %v5250_v3, %v1521_v60 }
 0x17e   :  { %v5283_v55 = vpop.eup %4448  ;;  %v1478_v18 = vmul.f32 1.0614054, %v5273_v8  ;;  %v1701_v46 = vsub.f32 1.0, %v1685_v30  ;;  %v1502_v37 = vmul.f32 %v5259_v21, %v1486_v50  ;;  %v1756_v48 = vadd.f32 1.0, %v1740_v40 }
 0x17f   :  { %v5293_v14 = vpop.eup %4450  ;;  %v1471_v15 = vmul.f32 1.0614054, %v5283_v55  ;;  %v1496_v29 = vadd.f32 -1.4531521, %v1480_v9  ;;  %v5319_v17 = vmul.f32 0.5, %v5137_v63  ;;  %v1757_v47 = vadd.f32 1.0, %v1741_v22 }
 0x180   :  { %v5311_v54 = vpop.eup %4452  ;;  %v1479_v6 = vmul.f32 1.0614054, %v5293_v14  ;;  %v1494_v62 = vadd.f32 -1.4531521, %v1478_v18  ;;  %v1654_v7 = vmul.f32 1.442695, %v1633_v35  ;;  %4454 = vpow2.f32 %v1652_v28 }
 0x181   :  { %v1487_v10 = vadd.f32 -1.4531521, %v1471_v15  ;;  %v1732_v12 = vsub.f32 0.0, %v1700_v25  ;;  %v1481_v13 = vmul.f32 1.0614054, %v5311_v54  ;;  %v1733_v11 = vsub.f32 0.0, %v1701_v46 }
 0x182   :  { %v1495_v30 = vadd.f32 -1.4531521, %v1479_v6  ;;  %v1512_v18 = vmul.f32 %v5268_v49, %v1496_v29  ;;  %v1518_v52 = vadd.f32 1.4214138, %v1502_v37  ;;  %v1510_v9 = vmul.f32 %v5273_v8, %v1494_v62 }
 0x183   :  { %v1568_v50 = vmul.f32 %v5243_v39, %v1552_v34  ;;  %v1553_v60 = vadd.f32 -0.28449672, %v1537_v59  ;;  %v5326_v63 = vmul.f32 %v1756_v48, %v1356_v32  ;;  %v1614_v15 = vsub.f32 0.0, %v5201_v2 }
 0x184   :  { %v1503_v35 = vmul.f32 %v5283_v55, %v1487_v10  ;;  %4456 = vpow2.f32 %v1654_v7  ;;  %v5331_v40 = vmul.f32 %v1757_v47, %v5265_v0  ;;  %v1748_v28 = vsel %vm1716_vm4, %v1700_v25, %v1732_v12 }
 0x185   :  { %v1640_v22 = vmul.f32 %v1624_v38, %v5219_v24  ;;  %v1497_v6 = vadd.f32 -1.4531521, %v1481_v13  ;;  %v1749_v29 = vsel %vm1717_vm5, %v1701_v46, %v1733_v11  ;;  %v1511_v32 = vmul.f32 %v5293_v14, %v1495_v30 }
 0x186   :  { %v1528_v37 = vadd.f32 1.4214138, %v1512_v18  ;;  %v1625_v62 = vsub.f32 0.0, %v5246_v16  ;;  %v1534_v10 = vmul.f32 %v5259_v21, %v1518_v52  ;;  %v1526_v7 = vadd.f32 1.4214138, %v1510_v9 }
 0x187   :  { %v1584_v34 = vadd.f32 0.2548296, %v1568_v50  ;;  %v1569_v47 = vmul.f32 %v5250_v3, %v1553_v60  ;;  %v1764_v0 = vadd.f32 1.0, %v1748_v28  ;;  %v1630_v42 = vmul.f32 %v1614_v15, %v5201_v2 }
 0x188   :  { %v1519_v12 = vadd.f32 1.4214138, %v1503_v35  ;;  %v1622_v24 = vsub.f32 0.0, %v5223_v27  ;;  %v1765_v25 = vadd.f32 1.0, %v1749_v29  ;;  %v1623_v46 = vsub.f32 0.0, %v5236_v53 }
 0x189   :  { %v1513_v59 = vmul.f32 %v5311_v54, %v1497_v6  ;;  %v1527_v48 = vadd.f32 1.4214138, %v1511_v32  ;;  %v1544_v38 = vmul.f32 %v5268_v49, %v1528_v37  ;;  %v1668_v13 = vmul.f32 1.442695, %v1640_v22 }
 0x18a   :  { %v1641_v11 = vmul.f32 %v1625_v62, %v5246_v16  ;;  %v1550_v30 = vadd.f32 -0.28449672, %v1534_v10  ;;  %v1542_v18 = vmul.f32 %v5273_v8, %v1526_v7  ;;  %v1600_v2 = vmul.f32 %v5243_v39, %v1584_v34  ;;  %v4455_v9 = vpop.eup %4454 }
 0x18b   :  { %v1585_v52 = vadd.f32 0.2548296, %v1569_v47  ;;  %v5352_v50 = vmul.f32 %v1764_v0, %v5277_v26  ;;  %v1648_v60 = vmul.f32 1.442695, %v1630_v42  ;;  %v1535_v15 = vmul.f32 %v5283_v55, %v1519_v12 }
 0x18c   :  { %v1638_v35 = vmul.f32 %v1622_v24, %v5223_v27  ;;  %v5357_v28 = vmul.f32 %v1765_v25, %v5290_v61  ;;  %v1631_v16 = vmul.f32 %v1615_v44, %v5227_v36  ;;  %v1639_v22 = vmul.f32 %v1623_v46, %v5236_v53 }
 0x18d   :  { %v1529_v6 = vadd.f32 1.4214138, %v1513_v59  ;;  %v1543_v39 = vmul.f32 %v5293_v14, %v1527_v48  ;;  %v1560_v32 = vadd.f32 -0.28449672, %v1544_v38  ;;  %4458 = vpow2.f32 %v1668_v13 }
 0x18e   :  { %v4457_v29 = vpop.eup %4456  ;;  %v1670_v26 = vmul.f32 1.442695, %v1641_v11  ;;  %v1566_v37 = vmul.f32 %v5259_v21, %v1550_v30  ;;  %v1558_v62 = vadd.f32 -0.28449672, %v1542_v18  ;;  %v5363_v10 = vmul.f32 %v4455_v9, %v1600_v2 }
 0x18f   :  { %v1601_v27 = vmul.f32 %v5250_v3, %v1585_v52  ;;  %4460 = vpow2.f32 %v1648_v60  ;;  %v1551_v7 = vadd.f32 -0.28449672, %v1535_v15  ;;  %v1664_v36 = vmul.f32 1.442695, %v1638_v35 }
 0x190   :  { %v1650_v47 = vmul.f32 1.442695, %v1631_v16  ;;  %v1666_v0 = vmul.f32 1.442695, %v1639_v22  ;;  %v1545_v42 = vmul.f32 %v5311_v54, %v1529_v6  ;;  %v1559_v25 = vadd.f32 -0.28449672, %v1543_v39 }
 0x191   :  { %v1576_v44 = vmul.f32 %v5268_v49, %v1560_v32  ;;  %v1582_v48 = vadd.f32 0.2548296, %v1566_v37  ;;  %v1574_v38 = vmul.f32 %v5273_v8, %v1558_v62  ;;  %v1567_v30 = vmul.f32 %v5283_v55, %v1551_v7 }
 0x192   :  { %4462 = vpow2.f32 %v1664_v36  ;;  %vm1711_vm8 = vcmp.ge.f32.partialorder %v5210_v58, 0.0  ;;  %vm1718_vm9 = vcmp.ge.f32.partialorder %v5204_v56, 0.0  ;;  %vm1719_vm10 = vcmp.ge.f32.partialorder %v5216_v23, 0.0 }
 0x193   :  { %4464 = vpow2.f32 %v1650_v47  ;;  %v1598_v35 = vmul.f32 %v5259_v21, %v1582_v48  ;;  %v1590_v16 = vadd.f32 0.2548296, %v1574_v38  ;;  %v1583_v32 = vadd.f32 0.2548296, %v1567_v30 }
 0x194   :  { %4466 = vpow2.f32 %v1666_v0  ;;  %v1696_v0 = vsub.f32 1.0, %v5363_v10  ;;  %v5424_v38 = vmul.f32 0.5, %v5179_v33  ;;  %v5427_v10 = vmul.f32 0.5, %v5213_v19 }
 0x195   :  { %4468 = vpow2.f32 %v1670_v26  ;;  %v1592_v26 = vadd.f32 0.2548296, %v1576_v44  ;;  %v5431_v44 = vadd.f32 %v5331_v40, %v5326_v63  ;;  %vm1720_vm11 = vcmp.ge.f32.partialorder %v5198_v57, 0.0 }
 0x197   :  { %v4459_v39 = vpop.eup %4458  ;;  %v1608_v19 = vmul.f32 %v5268_v49, %v1592_v26 }
 0x199   :  { %v4461_v21 = vpop.eup %4460 }
 0x1b0   :  { %v1347_v61 = vpop.f32.mrb[8].mxu1 }
 0x1b1   :  { %v5367_v53 = vadd.f32 %v1347_v61, %v5302_v31  ;;  %v1349_v34 = vpop.f32.mrb[9].mxu1  ;;  %v5411_v61 = vmul.f32 %v4457_v29, %v1601_v27  ;;  %v5420_v29 = vmul.f32 0.5, %v5149_v5 }
 0x1b2   :  { %v5371_v12 = vadd.f32 %v1349_v34, %v5309_v45  ;;  %v1351_v24 = vpop.f32.mrb[10].mxu1 }
 0x1b3   :  { %v5375_v3 = vmul.f32 0.70710677, %v5367_v53  ;;  %v5378_v46 = vadd.f32 %v1351_v24, %v5302_v31  ;;  %v1353_v59 = vpop.f32.mrb[11].mxu1  ;;  %v1561_v31 = vadd.f32 -0.28449672, %v1545_v42  ;;  %v1678_v24 = vmul.f32 %v4461_v21, %v1598_v35 }
 0x1b4   :  { %v5382_v13 = vmul.f32 0.70710677, %v5371_v12  ;;  %v5385_v11 = vadd.f32 %v1353_v59, %v5309_v45  ;;  %v1575_v45 = vmul.f32 %v5293_v14, %v1559_v25  ;;  %v1606_v25 = vmul.f32 %v5273_v8, %v1590_v16  ;;  %v4463_v8 = vpop.eup %4462 }
 0x1b5   :  { %v5389_v18 = vand.u32 2147483647, %v5375_v3  ;;  %v5392_v2 = vmul.f32 0.70710677, %v5378_v46  ;;  %v1577_v7 = vmul.f32 %v5311_v54, %v1561_v31  ;;  %v1599_v59 = vmul.f32 %v5283_v55, %v1583_v32  ;;  %v4465_v5 = vpop.eup %4464 }
 0x1b6   :  { %v5395_v52 = vand.u32 2147483647, %v5382_v13  ;;  %v5398_v9 = vmul.f32 0.70710677, %v5385_v11  ;;  %v1591_v47 = vadd.f32 0.2548296, %v1575_v45  ;;  %v5436_v45 = vadd.f32 %v5357_v28, %v5352_v50  ;;  %v4467_v35 = vpop.eup %4466 }
 0x1b7   :  { %v1410_v60 = vmul.f32 0.3275911, %v5389_v18  ;;  %v5403_v15 = vand.u32 2147483647, %v5392_v2  ;;  %v1697_v48 = vsub.f32 1.0, %v5411_v61  ;;  %v1728_v31 = vsub.f32 0.0, %v1696_v0  ;;  %v4469_v49 = vpop.eup %4468 }
 0x1b8   :  { %v1411_v22 = vmul.f32 0.3275911, %v5395_v52  ;;  %v5408_v6 = vand.u32 2147483647, %v5398_v9  ;;  %v1593_v30 = vadd.f32 0.2548296, %v1577_v7  ;;  %v1607_v55 = vmul.f32 %v5293_v14, %v1591_v47 }
 0x1b9   :  { %v1426_v37 = vadd.f32 1.0, %v1410_v60  ;;  %v1418_v62 = vmul.f32 0.3275911, %v5403_v15  ;;  %v1694_v33 = vsub.f32 1.0, %v1678_v24  ;;  %v1686_v60 = vmul.f32 %v4463_v8, %v1606_v25 }
 0x1ba   :  { %v1427_v36 = vadd.f32 1.0, %v1411_v22  ;;  %v1419_v34 = vmul.f32 0.3275911, %v5408_v6  ;;  %v5440_v16 = vmul.f32 0.5, %v5170_v20  ;;  %v1679_v22 = vmul.f32 %v4465_v5, %v1599_v59 }
 0x1bb   :  { %4470 = vrcp.f32 %v1426_v37  ;;  %v1434_v42 = vadd.f32 1.0, %v1418_v62  ;;  %v1618_v32 = vsub.f32 0.0, %v5389_v18  ;;  %v5444_v14 = vmul.f32 0.5, %v5188_v51 }
 0x1bc   :  { %4472 = vrcp.f32 %v1427_v36  ;;  %v1435_v27 = vadd.f32 1.0, %v1419_v34  ;;  %v5448_v37 = vsub.f32 0.0, %v1697_v48  ;;  %v1609_v62 = vmul.f32 %v5311_v54, %v1593_v30 }
 0x1bd   :  { %4474 = vrcp.f32 %v1434_v42  ;;  %v1619_v7 = vsub.f32 0.0, %v5395_v52  ;;  %v5454_v20 = vmul.f32 0.5, %v5184_v43  ;;  %v1687_v36 = vmul.f32 %v4467_v35, %v1607_v55 }
 0x1be   :  { %4476 = vrcp.f32 %v1435_v27  ;;  %v1744_v34 = vsel %vm1712_vm6, %v1696_v0, %v1728_v31  ;;  %v1726_v51 = vsub.f32 0.0, %v1694_v33  ;;  %v1702_v21 = vsub.f32 1.0, %v1686_v60 }
 0x1bf   :  { %v5459_v47 = vmul.f32 %v4459_v39, %v1608_v19  ;;  %v1695_v54 = vsub.f32 1.0, %v1679_v22  ;;  %v5464_v24 = vmul.f32 0.5, %v5195_v1  ;;  %v1634_v25 = vmul.f32 %v1618_v32, %v5389_v18  ;;  %v6393_v22 = vld [vmem:[#allocation10_spill] sm:$0xff] }
 0x1c0   :  { %v1626_v43 = vsub.f32 0.0, %v5403_v15  ;;  %v5471_v4 = vmul.f32 %v4469_v49, %v1609_v62  ;;  %v1635_v0 = vmul.f32 %v1619_v7, %v5395_v52  ;;  %v1703_v59 = vsub.f32 1.0, %v1687_v36 }
 0x1c1   :  { %v5476_v27 = vadd.f32 1.0, %v1744_v34  ;;  %v1627_v1 = vsub.f32 0.0, %v5408_v6  ;;  %v1742_v30 = vsel %vm1710_vm7, %v1694_v33, %v1726_v51  ;;  %v1734_v8 = vsub.f32 0.0, %v1702_v21  ;;  %v6394_v34 = vld [vmem:[#allocation12_spill] sm:$0xff] }
 0x1c2   :  { %v1704_v55 = vsub.f32 1.0, %v5459_v47  ;;  %v1727_v52 = vsub.f32 0.0, %v1695_v54  ;;  %v1656_v60 = vmul.f32 1.442695, %v1634_v25  ;;  %v1642_v19 = vmul.f32 %v1626_v43, %v5403_v15 }
 0x1c3   :  { %vm1713_vm12 = vcmp.ge.f32.partialorder %v6393_v22, 0.0  ;;  %v1705_v32 = vsub.f32 1.0, %v5471_v4  ;;  %v1658_v62 = vmul.f32 1.442695, %v1635_v0  ;;  %v1758_v49 = vadd.f32 1.0, %v1742_v30 }
 0x1c4   :  { %v1735_v36 = vsub.f32 0.0, %v1703_v59  ;;  %vm1721_vm13 = vcmp.ge.f32.partialorder %v6394_v34, 0.0  ;;  %v1643_v51 = vmul.f32 %v1627_v1, %v5408_v6  ;;  %v1750_v47 = vsel %vm1718_vm9, %v1702_v21, %v1734_v8 }
 0x1c5   :  { %v5461_v42 = vpop.eup %4470  ;;  %v1743_v0 = vsel %vm1711_vm8, %v1695_v54, %v1727_v52  ;;  %4478 = vpow2.f32 %v1656_v60  ;;  %v5508_v52 = vmul.f32 %v1758_v49, %v5440_v16  ;;  %vm1714_vm14 = vcmp.ge.f32.partialorder %v5375_v3, 0.0 }
 0x1c6   :  { %v5468_v26 = vpop.eup %4472  ;;  %v1474_v39 = vmul.f32 1.0614054, %v5461_v42  ;;  %4480 = vpow2.f32 %v1658_v62  ;;  %v1674_v56 = vmul.f32 1.442695, %v1643_v51  ;;  %v1751_v8 = vsel %vm1719_vm10, %v1703_v59, %v1735_v36 }
 0x1c7   :  { %v1475_v18 = vmul.f32 1.0614054, %v5468_v26  ;;  %v5483_v5 = vpop.eup %4474  ;;  %v1759_v60 = vadd.f32 1.0, %v1743_v0  ;;  %v1737_v62 = vsub.f32 0.0, %v1705_v32  ;;  %v1767_v23 = vadd.f32 1.0, %v1751_v8 }
 0x1c8   :  { %v1490_v31 = vadd.f32 -1.4531521, %v1474_v39  ;;  %v1482_v41 = vmul.f32 1.0614054, %v5483_v5  ;;  %v5491_v7 = vpop.eup %4476  ;;  %v1672_v39 = vmul.f32 1.442695, %v1642_v19 }
 0x1c9   :  { %v1491_v35 = vadd.f32 -1.4531521, %v1475_v18  ;;  %v1483_v4 = vmul.f32 1.0614054, %v5491_v7  ;;  %v1753_v57 = vsel %vm1721_vm13, %v1705_v32, %v1737_v62  ;;  %vm1715_vm15 = vcmp.ge.f32.partialorder %v5382_v13, 0.0 }
 0x1ca   :  { %v1506_v33 = vmul.f32 %v5461_v42, %v1490_v31  ;;  %v1498_v25 = vadd.f32 -1.4531521, %v1482_v41  ;;  %v1766_v31 = vadd.f32 1.0, %v1750_v47  ;;  %4482 = vpow2.f32 %v1672_v39 }
 0x1cb   :  { %v1507_v15 = vmul.f32 %v5468_v26, %v1491_v35  ;;  %v1499_v1 = vadd.f32 -1.4531521, %v1483_v4  ;;  %v1736_v35 = vsub.f32 0.0, %v1704_v55  ;;  %4484 = vpow2.f32 %v1674_v56 }
 0x1cc   :  { %v1522_v43 = vadd.f32 1.4214138, %v1506_v33  ;;  %v1514_v30 = vmul.f32 %v5483_v5, %v1498_v25  ;;  %v5513_v47 = vmul.f32 %v1766_v31, %v5454_v20  ;;  %v5522_v4 = vmul.f32 %v1759_v60, %v5444_v14 }
 0x1cd   :  { %v1523_v18 = vadd.f32 1.4214138, %v1507_v15  ;;  %v1515_v54 = vmul.f32 %v5491_v7, %v1499_v1  ;;  %v1752_v16 = vsel %vm1720_vm11, %v1704_v55, %v1736_v35  ;;  %v1745_v20 = vsel %vm1713_vm12, %v1697_v48, %v5448_v37 }
 0x1ce   :  { %v1538_v6 = vmul.f32 %v5461_v42, %v1522_v43  ;;  %v1530_v41 = vadd.f32 1.4214138, %v1514_v30  ;;  %v1791_v43 = vadd.f32 %v5431_v44, %v5508_v52  ;;  %v1800_v44 = vadd.f32 %v5436_v45, %v5513_v47 }
 0x1cf   :  { %v1539_v21 = vmul.f32 %v5468_v26, %v1523_v18  ;;  %v1531_v15 = vadd.f32 1.4214138, %v1515_v54  ;;  %v4479_v30 = vpop.eup %4478  ;;  %v5536_v14 = vmul.f32 %v1767_v23, %v5464_v24  ;;  %v1768_v61 = vadd.f32 1.0, %v1752_v16 }
 0x1d0   :  { %v1554_v58 = vadd.f32 -0.28449672, %v1538_v6  ;;  %v1546_v33 = vmul.f32 %v5483_v5, %v1530_v41  ;;  %v4481_v48 = vpop.eup %4480  ;;  %v1761_v37 = vadd.f32 1.0, %v1745_v20  ;;  %v1792_v1 = vadd.f32 %v1791_v43, %v5522_v4 }
 0x1d1   :  { %v1555_v19 = vadd.f32 -0.28449672, %v1539_v21  ;;  %v1547_v25 = vmul.f32 %v5491_v7, %v1531_v15  ;;  %v1769_v31 = vadd.f32 1.0, %v1753_v57  ;;  %v5548_v8 = vmul.f32 %v1768_v61, %v5424_v38  ;;  %v4168_v61 = vld [vmem:[%s6360_s5 + $0x4] ss:$12 sps:$4 sm:$0xff]  }
 0x1d2   :  { %v1570_v51 = vmul.f32 %v5461_v42, %v1554_v58  ;;  %v1562_v49 = vadd.f32 -0.28449672, %v1546_v33  ;;  %v5551_v58 = vmul.f32 %v1761_v37, %v5420_v29  ;;  %v1362_v15 = vmul.f32 0.5, %v5367_v53  ;;  %3316 = vmatprep.subr.bf16.mxu0 %v4168_v61  ;;  %v4172_v37 = vld [vmem:[%s6360_s5 + $0x30] ss:$12 sps:$4 sm:$0xff]  }
 0x1d3   :  { %v1571_v59 = vmul.f32 %v5468_v26, %v1555_v19  ;;  %v1563_v18 = vadd.f32 -0.28449672, %v1547_v25  ;;  %v5555_v19 = vmul.f32 %v1769_v31, %v5427_v10  ;;  %vm1722_vm0 = vcmp.ge.f32.partialorder %v5392_v2, 0.0  ;;  %v4183_v31 = vld [vmem:[%s6360_s5 + $0x7c] ss:$12 sps:$4 sm:$0xff]  }
 0x1d4   :  { %v1586_v36 = vadd.f32 0.2548296, %v1570_v51  ;;  %v1578_v55 = vmul.f32 %v5483_v5, %v1562_v49  ;;  %v4483_v21 = vpop.eup %4482  ;;  %v1370_v20 = vmul.f32 0.5, %v5378_v46  ;;  %vm1723_vm2 = vcmp.ge.f32.partialorder %v5398_v9, 0.0  ;;  %v4166_v9 = vld [vmem:[%s6360_s5] ss:$12 sps:$4 sm:$0xff]  }
 0x1d5   :  { %v1587_v0 = vadd.f32 0.2548296, %v1571_v59  ;;  %v1579_v32 = vmul.f32 %v5491_v7, %v1563_v18  ;;  %v1363_v59 = vmul.f32 0.5, %v5371_v12  ;;  %v1371_v2 = vmul.f32 0.5, %v5385_v11  ;;  %v4171_v11 = vld [vmem:[%s6360_s5 + $0x1c] ss:$12 sps:$4 sm:$0xff]   ;;  %3317 = vmatpush1.bf16.msra.mxu0 %v4166_v9 }
 0x1d6   :  { %v1602_v39 = vmul.f32 %v5461_v42, %v1586_v36  ;;  %v1594_v6 = vadd.f32 0.2548296, %v1578_v55  ;;  %v5543_v42 = vmul.f32 %v5476_v27, %v5319_v17  ;;  %v4485_v27 = vpop.eup %4484  ;;  %3318 = vmatprep.subr.bf16.mxu0 %v4171_v11  ;;  %v4189_v9 = vld [vmem:[%s6360_s5 + $0xac] ss:$12 sps:$4 sm:$0xff]   ;;  %v4187_v61 = vld [vmem:[%s6360_s5 + $0xa8] ss:$12 sps:$4 sm:$0xff]  }
 0x1d7   :  { %v1603_v22 = vmul.f32 %v5468_v26, %v1587_v0  ;;  %v1595_v56 = vadd.f32 0.2548296, %v1579_v32  ;;  %v1801_v26 = vadd.f32 %v1800_v44, %v5536_v14  ;;  %v4180_v32 = vld [vmem:[%s6360_s5 + $0x64] ss:$12 sps:$4 sm:$0xff]  }
 0x1d8   :  { %v1682_v34 = vmul.f32 %v4479_v30, %v1602_v39  ;;  %v1610_v24 = vmul.f32 %v5483_v5, %v1594_v6  ;;  %v1793_v62 = vadd.f32 %v1792_v1, %v5543_v42  ;;  %v4177_v6 = vld [vmem:[%s6360_s5 + $0x4c] ss:$12 sps:$4 sm:$0xff]   ;;  %v4192_v11 = vld [vmem:[%s6360_s5 + $0xc4] ss:$12 sps:$4 sm:$0xff]  }
 0x1d9   :  { %v1683_v45 = vmul.f32 %v4481_v48, %v1603_v22  ;;  %v1611_v17 = vmul.f32 %v5491_v7, %v1595_v56  ;;  %v1802_v29 = vadd.f32 %v1801_v26, %v5548_v8  ;;  %v4169_v22 = vld [vmem:[%s6360_s5 + $0x18] ss:$12 sps:$4 sm:$0xff]   ;;  %v4174_v48 = vld [vmem:[%s6360_s5 + $0x34] ss:$12 sps:$4 sm:$0xff]  }
 0x1da   :  { %v1698_v35 = vsub.f32 1.0, %v1682_v34  ;;  %v1690_v54 = vmul.f32 %v4483_v21, %v1610_v24  ;;  %v1794_v13 = vadd.f32 %v1793_v62, %v5551_v58  ;;  %3319 = vmatpush1.bf16.msra.mxu0 %v4169_v22  ;;  %v4175_v34 = vld [vmem:[%s6360_s5 + $0x48] ss:$12 sps:$4 sm:$0xff]   ;;  %v4178_v1 = vld [vmem:[%s6360_s5 + $0x60] ss:$12 sps:$4 sm:$0xff]  }
 0x1db   :  { %v1699_v41 = vsub.f32 1.0, %v1683_v45  ;;  %v1691_v51 = vmul.f32 %v4485_v27, %v1611_v17  ;;  %v1803_v57 = vadd.f32 %v1802_v29, %v5555_v19  ;;  %3320 = vmatprep.subr.bf16.mxu0 %v4174_v48  ;;  %v4181_v45 = vld [vmem:[%s6360_s5 + $0x78] ss:$12 sps:$4 sm:$0xff]   ;;  %v4193_v22 = vld [vmem:[%s6360_s5 + $0xc8] ss:$12 sps:$4 sm:$0xff]  }
 0x1dc   :  { %v1730_v60 = vsub.f32 0.0, %v1698_v35  ;;  %v1706_v38 = vsub.f32 1.0, %v1690_v54  ;;  %v4190_v48 = vld [vmem:[%s6360_s5 + $0xc0] ss:$12 sps:$4 sm:$0xff]   ;;  %4026 = vmatprep.subr.bf16.mxu1 %v4193_v22 }
 0x1dd   :  { %v1731_v5 = vsub.f32 0.0, %v1699_v41  ;;  %v1707_v49 = vsub.f32 1.0, %v1691_v51 }
 0x1de   :  { %v1746_v33 = vsel %vm1714_vm14, %v1698_v35, %v1730_v60  ;;  %v1738_v10 = vsub.f32 0.0, %v1706_v38  ;;  %3321 = vmatpush1.bf16.msra.mxu0 %v4172_v37  ;;  %v4194_v37 = vld [vmem:[%s6360_s5 + $0x8] ss:$12 sps:$4 sm:$0xff]  }
 0x1df   :  { %v1747_v23 = vsel %vm1715_vm15, %v1699_v41, %v1731_v5  ;;  %v1762_v7 = vadd.f32 1.0, %v1746_v33  ;;  %v1739_v43 = vsub.f32 0.0, %v1707_v49  ;;  %3322 = vmatprep.subr.bf16.mxu0 %v4177_v6  ;;  %4027 = vmatpush3.bf16.msra.mxu1 %v4194_v37  ;;  %v4197_v6 = vld [vmem:[%s6360_s5 + $0xdc] ss:$12 sps:$4 sm:$0xff]  }
 0x1e0   :  { %v1763_v16 = vadd.f32 1.0, %v1747_v23  ;;  %v1754_v36 = vsel %vm1722_vm0, %v1706_v38, %v1738_v10 }
 0x1e1   :  { %v5564_v3 = vmul.f32 %v1762_v7, %v1362_v15  ;;  %v1770_v53 = vadd.f32 1.0, %v1754_v36  ;;  %v1755_v0 = vsel %vm1723_vm2, %v1707_v49, %v1739_v43 }
 0x1e2   :  { %v5567_v25 = vmul.f32 %v1763_v16, %v1363_v59  ;;  %v1771_v18 = vadd.f32 1.0, %v1755_v0  ;;  %3323 = vmatpush1.bf16.msra.mxu0 %v4175_v34  ;;  %v4198_v34 = vld [vmem:[%s6360_s5 + $0xe0] ss:$12 sps:$4 sm:$0xff]  }
 0x1e3   :  { %v1795_v12 = vadd.f32 %v1794_v13, %v5564_v3  ;;  %v5573_v55 = vmul.f32 %v1770_v53, %v1370_v20  ;;  %3324 = vmatprep.subr.bf16.mxu0 %v4180_v32  ;;  %v4195_v32 = vld [vmem:[%s6360_s5 + $0xd8] ss:$12 sps:$4 sm:$0xff]   ;;  %4028 = vmatprep.subr.bf16.mxu1 %v4198_v34 }
 0x1e4   :  { %v5577_v30 = vmul.f32 %v1771_v18, %v1371_v2 }
 0x1e5   :  { %v1796_v39 = vadd.f32 %v1795_v12, %v5567_v25  ;;  %v1804_v46 = vadd.f32 %v1803_v57, %v5573_v55 }
 0x1e6   :  { %3325 = vmatpush1.bf16.msra.mxu0 %v4178_v1  ;;  %v4199_v1 = vld [vmem:[%s6360_s5 + $0x20] ss:$12 sps:$4 sm:$0xff]  }
 0x1e7   :  { %1797 = vadd.xlane.f32.xlu0 %v1796_v39  ;;  %v1805_v44 = vadd.f32 %v1804_v46, %v5577_v30  ;;  %3326 = vmatprep.subr.bf16.mxu0 %v4183_v31  ;;  %v4202_v31 = vld [vmem:[%s6360_s5 + $0xf4] ss:$12 sps:$4 sm:$0xff]  }
 0x1e8   :  { %4029 = vmatpush3.bf16.msra.mxu1 %v4199_v1 }
 0x1ea   :  { %3327 = vmatpush1.bf16.msra.mxu0 %v4181_v45  ;;  %v4203_v45 = vld [vmem:[%s6360_s5 + $0xf8] ss:$12 sps:$4 sm:$0xff]  }
 0x1eb   :  { %1806 = vadd.xlane.f32.xlu0 %v1805_v44  ;;  %v4184_v44 = vld [vmem:[%s6360_s5 + $0x90] ss:$12 sps:$4 sm:$0xff]   ;;  %4030 = vmatprep.subr.bf16.mxu1 %v4203_v45 }
 0x274   :  { %v1798_v24 = vpop.xlane.xlu0 %1797 }
 0x275   :  { %v1809_v35 = vmul.f32 0.0009765625, %v1798_v24  ;;  %v4200_v24 = vld [vmem:[%s6360_s5 + $0xf0] ss:$12 sps:$4 sm:$0xff]  }
 0x277   :  { %v5618_v56 = vsub.f32 %v5326_v63, %v1809_v35  ;;  %v5621_v21 = vsub.f32 %v5331_v40, %v1809_v35  ;;  %v5624_v26 = vsub.f32 %v5508_v52, %v1809_v35  ;;  %v5627_v60 = vsub.f32 %v5522_v4, %v1809_v35 }
 0x278   :  { %v1807_v41 = vpop.xlane.xlu0 %1806  ;;  %v5634_v63 = vsub.f32 %v5543_v42, %v1809_v35  ;;  %v5648_v38 = vsub.f32 %v5551_v58, %v1809_v35 }
 0x279   :  { %v1810_v54 = vmul.f32 0.0009765625, %v1807_v41  ;;  %v1827_v17 = vmul.f32 %v5618_v56, %v5618_v56  ;;  %v1828_v27 = vmul.f32 %v5621_v21, %v5621_v21  ;;  %v1829_v40 = vmul.f32 %v5624_v26, %v5624_v26  ;;  %v4207_v41 = vld [vmem:[%s6360_s5 + $0x10c] ss:$12 sps:$4 sm:$0xff]  }
 0x27a   :  { %v1830_v42 = vmul.f32 %v5627_v60, %v5627_v60  ;;  %v1832_v59 = vmul.f32 %v5648_v38, %v5648_v38 }
 0x27b   :  { %v1843_v5 = vadd.f32 %v1828_v27, %v1827_v17  ;;  %v5639_v52 = vsub.f32 %v5352_v50, %v1810_v54  ;;  %v5642_v62 = vsub.f32 %v5357_v28, %v1810_v54  ;;  %v5645_v4 = vsub.f32 %v5513_v47, %v1810_v54  ;;  %v4205_v17 = vld [vmem:[%s6360_s5 + $0x108] ss:$12 sps:$4 sm:$0xff]   ;;  %v4209_v27 = vld [vmem:[%s6360_s5 + $0x50] ss:$12 sps:$4 sm:$0xff]  }
 0x27c   :  { %v5655_v29 = vsub.f32 %v5536_v14, %v1810_v54  ;;  %v5660_v28 = vsub.f32 %v5564_v3, %v1809_v35  ;;  %v1831_v47 = vmul.f32 %v5634_v63, %v5634_v63  ;;  %v5665_v15 = vsub.f32 %v5548_v8, %v1810_v54 }
 0x27d   :  { %v1844_v33 = vadd.f32 %v1843_v5, %v1829_v40  ;;  %v1835_v51 = vmul.f32 %v5639_v52, %v5639_v52  ;;  %v1836_v50 = vmul.f32 %v5642_v62, %v5642_v62  ;;  %v1837_v23 = vmul.f32 %v5645_v4, %v5645_v4  ;;  %v4212_v40 = vld [vmem:[%s6360_s5 + $0x124] ss:$12 sps:$4 sm:$0xff]   ;;  %v4213_v5 = vld [vmem:[%s6360_s5 + $0x128] ss:$12 sps:$4 sm:$0xff]  }
 0x27e   :  { %v5670_v14 = vsub.f32 %v5567_v25, %v1809_v35  ;;  %v5675_v16 = vsub.f32 %v5555_v19, %v1810_v54  ;;  %v1838_v49 = vmul.f32 %v5655_v29, %v5655_v29  ;;  %v1833_v8 = vmul.f32 %v5660_v28, %v5660_v28  ;;  %v4204_v35 = vld [vmem:[%s6360_s5 + $0x38] ss:$12 sps:$4 sm:$0xff]  }
 0x27f   :  { %v1845_v58 = vadd.f32 %v1844_v33, %v1830_v42  ;;  %v1852_v7 = vadd.f32 %v1836_v50, %v1835_v51  ;;  %v5682_v36 = vsub.f32 %v5573_v55, %v1810_v54  ;;  %v1839_v25 = vmul.f32 %v5665_v15, %v5665_v15  ;;  %4031 = vmatpush3.bf16.msra.mxu1 %v4204_v35  ;;  %v4210_v42 = vld [vmem:[%s6360_s5 + $0x120] ss:$12 sps:$4 sm:$0xff]   ;;  %v4214_v33 = vld [vmem:[%s6360_s5 + $0x68] ss:$12 sps:$4 sm:$0xff]  }
 0x280   :  { %v1834_v20 = vmul.f32 %v5670_v14, %v5670_v14  ;;  %v5689_v53 = vsub.f32 %v5577_v30, %v1810_v54  ;;  %v1840_v12 = vmul.f32 %v5675_v16, %v5675_v16  ;;  %v4186_v30 = vld [vmem:[%s6360_s5 + $0x94] ss:$12 sps:$4 sm:$0xff]   ;;  %v4208_v54 = vld [vmem:[%s6360_s5 + $0x110] ss:$12 sps:$4 sm:$0xff]  }
 0x281   :  { %v1846_v10 = vadd.f32 %v1845_v58, %v1831_v47  ;;  %v1853_v3 = vadd.f32 %v1852_v7, %v1837_v23  ;;  %v1841_v55 = vmul.f32 %v5682_v36, %v5682_v36  ;;  %3328 = vmatprep.subr.bf16.mxu0 %v4186_v30  ;;  %4032 = vmatprep.subr.bf16.mxu1 %v4208_v54  ;;  %v4217_v51 = vld [vmem:[%s6360_s5 + $0x13c] ss:$12 sps:$4 sm:$0xff]   ;;  %v4218_v50 = vld [vmem:[%s6360_s5 + $0x140] ss:$12 sps:$4 sm:$0xff]   ;;  %v4215_v47 = vld [vmem:[%s6360_s5 + $0x138] ss:$12 sps:$4 sm:$0xff]  }
 0x282   :  { %v1842_v39 = vmul.f32 %v5689_v53, %v5689_v53  ;;  %3329 = vmatpush1.bf16.msra.mxu0 %v4184_v44  ;;  %v4219_v58 = vld [vmem:[%s6360_s5 + $0x80] ss:$12 sps:$4 sm:$0xff]   ;;  %v4223_v7 = vld [vmem:[%s6360_s5 + $0x158] ss:$12 sps:$4 sm:$0xff]   ;;  %v6398_v54 = vld [vmem:[#allocation5_spill] sm:$0xff] }
 0x283   :  { %v1847_v13 = vadd.f32 %v1846_v10, %v1832_v59  ;;  %v1854_v43 = vadd.f32 %v1853_v3, %v1838_v49  ;;  %3330 = vmatprep.subr.bf16.mxu0 %v4189_v9  ;;  %4033 = vmatpush3.bf16.msra.mxu1 %v4209_v27  ;;  %v4222_v23 = vld [vmem:[%s6360_s5 + $0x154] ss:$12 sps:$4 sm:$0xff]   ;;  %v4220_v59 = vld [vmem:[%s6360_s5 + $0x150] ss:$12 sps:$4 sm:$0xff]   ;;  %v4224_v10 = vld [vmem:[%s6360_s5 + $0x98] ss:$12 sps:$4 sm:$0xff]  }
 0x284   :  { %4034 = vmatprep.subr.bf16.mxu1 %v4213_v5  ;;  %v4227_v49 = vld [vmem:[%s6360_s5 + $0x16c] ss:$12 sps:$4 sm:$0xff]   ;;  %v4228_v3 = vld [vmem:[%s6360_s5 + $0x170] ss:$12 sps:$4 sm:$0xff]  }
 0x285   :  { %v1848_v19 = vadd.f32 %v1847_v13, %v1833_v8  ;;  %v1855_v0 = vadd.f32 %v1854_v43, %v1839_v25  ;;  %v4225_v8 = vld [vmem:[%s6360_s5 + $0x168] ss:$12 sps:$4 sm:$0xff]   ;;  %v4229_v13 = vld [vmem:[%s6360_s5 + $0xb0] ss:$12 sps:$4 sm:$0xff]  }
 0x286   :  { %3331 = vmatpush1.bf16.msra.mxu0 %v4187_v61  ;;  %v4232_v25 = vld [vmem:[%s6360_s5 + $0x184] ss:$12 sps:$4 sm:$0xff]   ;;  %v4233_v43 = vld [vmem:[%s6360_s5 + $0x248] ss:$12 sps:$4 sm:$0xff]  }
 0x287   :  { %v1849_v57 = vadd.f32 %v1848_v19, %v1834_v20  ;;  %v1856_v2 = vadd.f32 %v1855_v0, %v1840_v12  ;;  %3332 = vmatprep.subr.bf16.mxu0 %v4192_v11  ;;  %4035 = vmatpush3.bf16.msra.mxu1 %v4214_v33  ;;  %v6399_v5 = vld [vmem:[#allocation13_spill] sm:$0xff] }
 0x288   :  { %4036 = vmatprep.subr.bf16.mxu1 %v4218_v50 }
 0x289   :  { %1850 = vadd.xlane.f32.xlu1 %v1849_v57  ;;  %v1857_v18 = vadd.f32 %v1856_v2, %v1841_v55 }
 0x28a   :  { %3333 = vmatpush1.bf16.msra.mxu0 %v4190_v48  ;;  %v5814_v48 = vld [vmem:[%s6358_s3] sm:$0xff] }
 0x28b   :  { %v1858_v46 = vadd.f32 %v1857_v18, %v1842_v39  ;;  %3334 = vmatprep.subr.bf16.mxu0 %v4197_v6  ;;  %4037 = vmatpush3.bf16.msra.mxu1 %v4219_v58  ;;  %v6395_v6 = vld [vmem:[#allocation7_spill] sm:$0xff] }
 0x28c   :  { %4038 = vmatprep.subr.bf16.mxu1 %v4223_v7  ;;  %v1917_v34 = vrot.slane %v5814_v48, %v6395_v6 }
 0x28d   :  { %1859 = vadd.xlane.f32.xlu1 %v1858_v46 }
 0x28e   :  { %3335 = vmatpush1.bf16.msra.mxu0 %v4195_v32  ;;  %v5823_v32 = vld [vmem:[%s6359_s4] sm:$0xff] }
 0x28f   :  { %3336 = vmatprep.subr.bf16.mxu0 %v4202_v31  ;;  %4039 = vmatpush3.bf16.msra.mxu1 %v4224_v10  ;;  %v6396_v31 = vld [vmem:[#allocation6_spill] sm:$0xff]  ;;  %v1958_v50 = vrot.slane %v5823_v32, %v6398_v54 }
 0x290   :  { %4040 = vmatprep.subr.bf16.mxu1 %v4228_v3  ;;  %v1905_v45 = vrot.slane %v5814_v48, %v6396_v31 }
 0x292   :  { %3337 = vmatpush1.bf16.msra.mxu0 %v4200_v24  ;;  %v6397_v24 = vld [vmem:[#allocation14_spill] sm:$0xff] }
 0x293   :  { %3338 = vmatprep.subr.bf16.mxu0 %v4207_v41  ;;  %4041 = vmatpush3.bf16.msra.mxu1 %v4229_v13  ;;  %v1929_v35 = vrot.slane %v5814_v48, %v6397_v24  ;;  %v1986_v7 = vrot.slane %v5823_v32, %v6397_v24 }
 0x294   :  { %4048 = vmatprep.subr.bf16.mxu1 %v4233_v43 }
 0x296   :  { %3339 = vmatpush1.bf16.msra.mxu0 %v4205_v17  ;;  %v1901_v17 = vrot.slane %v5814_v48, %v6398_v54 }
 0x297   :  { %3340 = vmatprep.subr.bf16.mxu0 %v4212_v40 }
 0x29a   :  { %3341 = vmatpush1.bf16.msra.mxu0 %v4210_v42  ;;  %v6400_v42 = vld [vmem:[#allocation11_spill] sm:$0xff] }
 0x29b   :  { %3342 = vmatprep.subr.bf16.mxu0 %v4217_v51  ;;  %v1913_v33 = vrot.slane %v5814_v48, %v6400_v42  ;;  %v1974_v51 = vrot.slane %v5823_v32, %v6395_v6 }
 0x29e   :  { %3343 = vmatpush1.bf16.msra.mxu0 %v4215_v47 }
 0x29f   :  { %3344 = vmatprep.subr.bf16.mxu0 %v4222_v23 }
 0x2a2   :  { %3345 = vmatpush1.bf16.msra.mxu0 %v4220_v59 }
 0x2a3   :  { %3346 = vmatprep.subr.bf16.mxu0 %v4227_v49 }
 0x2a6   :  { %3347 = vmatpush1.bf16.msra.mxu0 %v4225_v8  ;;  %v1970_v8 = vrot.slane %v5823_v32, %v6400_v42  ;;  %v4240_v42 = vld [vmem:[%s6360_s5 + $0x1b0] ss:$12 sps:$4 sm:$0xff]  }
 0x2a7   :  { %3359 = vmatprep.subr.bf16.mxu0 %v4232_v25 }
 0x316   :  { %v1851_v20 = vpop.xlane.xlu1 %1850 }
 0x317   :  { %v1861_v19 = vmul.f32 0.0009765625, %v1851_v20 }
 0x319   :  { %v1863_v12 = vadd.f32 1e-12, %v1861_v19 }
 0x31a   :  { %v1860_v0 = vpop.xlane.xlu1 %1859 }
 0x31b   :  { %4486 = vrsqrt.f32 %v1863_v12  ;;  %v1862_v57 = vmul.f32 0.0009765625, %v1860_v0  ;;  %vm1867_vm3 = vcmp.eq.f32.partialorder %v1863_v12, inf  ;;  %v1870_v18 = vand.u32 2147483648, %v1863_v12 }
 0x31c   :  { %vm1869_vm4 = vcmp.eq.f32.partialorder %v1863_v12, 0.0 }
 0x31d   :  { %v1864_v55 = vadd.f32 1e-12, %v1862_v57 }
 0x31f   :  { %4488 = vrsqrt.f32 %v1864_v55  ;;  %vm1874_vm5 = vcmp.eq.f32.partialorder %v1864_v55, inf  ;;  %v1877_v61 = vand.u32 2147483648, %v1864_v55  ;;  %vm1876_vm6 = vcmp.eq.f32.partialorder %v1864_v55, 0.0 }
 0x325   :  { %v4487_v2 = vpop.eup %4486 }
 0x326   :  { %v1866_v39 = vmul.f32 %v4487_v2, %v1863_v12 }
 0x328   :  { %v1868_v46 = vsel %vm1867_vm3, %v1863_v12, %v1866_v39 }
 0x329   :  { %v1871_v30 = vsel %vm1869_vm4, %v1870_v18, %v1868_v46  ;;  %v4489_v44 = vpop.eup %4488 }
 0x32a   :  { %4490 = vrcp.f32 %v1871_v30  ;;  %v1873_v9 = vmul.f32 %v4489_v44, %v1864_v55 }
 0x32c   :  { %v1875_v11 = vsel %vm1874_vm5, %v1864_v55, %v1873_v9  ;;  %v4230_v9 = vld [vmem:[%s6360_s5 + $0x180] ss:$12 sps:$4 sm:$0xff]  }
 0x32d   :  { %v1878_v22 = vsel %vm1876_vm6, %v1877_v61, %v1875_v11 }
 0x32e   :  { %4492 = vrcp.f32 %v1878_v22 }
 0x334   :  { %v5816_v37 = vpop.eup %4490 }
 0x335   :  { %v1881_v1 = vmul.f32 %v5816_v37, %v5621_v21  ;;  %v1880_v41 = vmul.f32 %v5816_v37, %v5618_v56  ;;  %v1884_v27 = vmul.f32 %v5816_v37, %v5634_v63  ;;  %v1887_v40 = vmul.f32 %v5816_v37, %v5670_v14 }
 0x336   :  { %v1925_v21 = vrot.slane %v5814_v48, %v6399_v5  ;;  %v1962_v56 = vrot.slane %v5823_v32, %v6396_v31  ;;  %v1883_v63 = vmul.f32 %v5816_v37, %v5627_v60  ;;  %v1886_v59 = vmul.f32 %v5816_v37, %v5660_v28 }
 0x337   :  { %v1942_v47 = vmul.f32 %v1917_v34, %v1884_v27  ;;  %v1939_v58 = vmul.f32 %v1905_v45, %v1881_v1  ;;  %v1945_v23 = vmul.f32 %v1929_v35, %v1887_v40  ;;  %v1938_v3 = vmul.f32 %v1901_v17, %v1880_v41  ;;  %v4238_v1 = vld [vmem:[%s6360_s5 + $0x260] ss:$12 sps:$4 sm:$0xff]  }
 0x338   :  { %v5851_v14 = vpop.eup %4492  ;;  %v1982_v28 = vrot.slane %v5823_v32, %v6399_v5  ;;  %v4239_v27 = vld [vmem:[%s6360_s5 + $0x1a0] ss:$12 sps:$4 sm:$0xff]   ;;  %v4243_v5 = vld [vmem:[%s6360_s5 + $0x278] ss:$12 sps:$4 sm:$0xff]  }
 0x339   :  { %v1890_v10 = vmul.f32 %v5851_v14, %v5642_v62  ;;  %v1889_v49 = vmul.f32 %v5851_v14, %v5639_v52  ;;  %v1892_v60 = vmul.f32 %v5851_v14, %v5655_v29  ;;  %v1893_v13 = vmul.f32 %v5851_v14, %v5665_v15  ;;  %v4242_v40 = vld [vmem:[%s6360_s5 + $0x1b4] ss:$12 sps:$4 sm:$0xff]  }
 0x33a   :  { %v1999_v25 = vadd.f32 %v1974_v51, %v1942_v47  ;;  %v1941_v62 = vmul.f32 %v1913_v33, %v1883_v63  ;;  %v1896_v52 = vmul.f32 %v5851_v14, %v5689_v53  ;;  %v2002_v0 = vadd.f32 %v1986_v7, %v1945_v23  ;;  %v4234_v53 = vld [vmem:[%s6360_s5 + $0x188] ss:$12 sps:$4 sm:$0xff]   ;;  %v4249_v63 = vld [vmem:[%s6360_s5 + $0x1d0] ss:$12 sps:$4 sm:$0xff]   ;;  %v4250_v23 = vld [vmem:[%s6360_s5 + $0x1e0] ss:$12 sps:$4 sm:$0xff]  }
 0x33b   :  { %v1947_v43 = vmul.f32 %v1905_v45, %v1890_v10  ;;  %v1946_v20 = vmul.f32 %v1901_v17, %v1889_v49  ;;  %v1949_v19 = vmul.f32 %v1913_v33, %v1892_v60  ;;  %v1950_v12 = vmul.f32 %v1917_v34, %v1893_v13  ;;  %v4235_v17 = vld [vmem:[%s6360_s5 + $0x198] ss:$12 sps:$4 sm:$0xff]   ;;  %v4258_v10 = vld [vmem:[%s6360_s5 + $0x2c0] ss:$12 sps:$4 sm:$0xff]  }
 0x33c   :  { %v1944_v29 = vmul.f32 %v1925_v21, %v1886_v59  ;;  %v1996_v57 = vadd.f32 %v1962_v56, %v1939_v58  ;;  %v1995_v2 = vadd.f32 %v1958_v50, %v1938_v3  ;;  %v1953_v46 = vmul.f32 %v1929_v35, %v1896_v52  ;;  %v4244_v33 = vld [vmem:[%s6360_s5 + $0x1b8] ss:$12 sps:$4 sm:$0xff]   ;;  %v4253_v58 = vld [vmem:[%s6360_s5 + $0x2a8] ss:$12 sps:$4 sm:$0xff]   ;;  %v4259_v3 = vld [vmem:[%s6360_s5 + $0x200] ss:$12 sps:$4 sm:$0xff]  }
 0x33d   :  { %v2004_v55 = vadd.f32 %v1962_v56, %v1947_v43  ;;  %v2003_v39 = vadd.f32 %v1958_v50, %v1946_v20  ;;  %v2006_v18 = vadd.f32 %v1970_v8, %v1949_v19  ;;  %v2007_v15 = vadd.f32 %v1974_v51, %v1950_v12  ;;  %v4247_v51 = vld [vmem:[%s6360_s5 + $0x1cc] ss:$12 sps:$4 sm:$0xff]   ;;  %v4248_v56 = vld [vmem:[%s6360_s5 + $0x290] ss:$12 sps:$4 sm:$0xff]   ;;  %v4245_v50 = vld [vmem:[%s6360_s5 + $0x1c8] ss:$12 sps:$4 sm:$0xff]  }
 0x33e   :  { %v1895_v30 = vmul.f32 %v5851_v14, %v5682_v36  ;;  %v1998_v11 = vadd.f32 %v1970_v8, %v1941_v62  ;;  %v2010_v6 = vadd.f32 %v1986_v7, %v1953_v46  ;;  %v4237_v36 = vld [vmem:[%s6360_s5 + $0x19c] ss:$12 sps:$4 sm:$0xff]   ;;  %v2001_v45 = vadd.f32 %v1982_v28, %v1944_v29  ;;  %v4252_v47 = vld [vmem:[%s6360_s5 + $0x1e4] ss:$12 sps:$4 sm:$0xff]   ;;  %v4262_v60 = vld [vmem:[%s6360_s5 + $0x214] ss:$12 sps:$4 sm:$0xff]  }
 0x33f   :  { %v2012_v44 = vpack.c.bf16 %v2004_v55, %v1996_v57  ;;  %v2011_v61 = vpack.c.bf16 %v2003_v39, %v1995_v2  ;;  %v5879_v22 = vpack.c.bf16 %v2007_v15, %v1999_v25  ;;  %v4254_v7 = vld [vmem:[%s6360_s5 + $0x1e8] ss:$12 sps:$4 sm:$0xff]   ;;  %v4255_v49 = vld [vmem:[%s6360_s5 + $0x1f8] ss:$12 sps:$4 sm:$0xff]   ;;  %v1891_v13 = vmul.f32 %v5851_v14, %v5645_v4  ;;  %v4260_v62 = vld [vmem:[%s6360_s5 + $0x210] ss:$12 sps:$4 sm:$0xff]  }
 0x340   :  { %v1952_v34 = vmul.f32 %v1925_v21, %v1895_v30  ;;  %v2014_v24 = vpack.c.bf16 %v2006_v18, %v1998_v11  ;;  %v5887_v35 = vpack.c.bf16 %v2010_v6, %v2002_v0  ;;  %v4257_v59 = vld [vmem:[%s6360_s5 + $0x1fc] ss:$12 sps:$4 sm:$0xff]   ;;  %v4263_v8 = vld [vmem:[%s6360_s5 + $0x2d8] ss:$12 sps:$4 sm:$0xff]   ;;  %v1882_v25 = vmul.f32 %v5816_v37, %v5624_v26  ;;  %v4270_v30 = vld [vmem:[%s6360_s5 + $0x240] ss:$12 sps:$4 sm:$0xff]  }
 0x341   :  { %3348 = vmatprep.mubr.bf16.mxu0 %v2012_v44  ;;  %3520 = vmatprep.mubr.bf16.mxu1 %v2012_v44  ;;  %v1894_v20 = vmul.f32 %v5851_v14, %v5675_v16  ;;  %v4264_v19 = vld [vmem:[%s6360_s5 + $0x218] ss:$12 sps:$4 sm:$0xff]   ;;  %v4268_v4 = vld [vmem:[%s6360_s5 + $0x2f0] ss:$12 sps:$4 sm:$0xff]   ;;  %v1885_v14 = vmul.f32 %v5816_v37, %v5648_v38  ;;  %v6402_v12 = vld [vmem:[#allocation8_spill] sm:$0xff] }
 0x342   :  { %3349 = vmatmul.mubr.bf16.vlgmr.msra.gmra.mrb[8].mxu0 %v2011_v61  ;;  %3521 = vmatmul.mubr.bf16.vlgmr.msra.gmra.mrb[12].mxu1 %v2011_v61  ;;  %v2009_v41 = vadd.f32 %v1982_v28, %v1952_v34  ;;  %v6401_v28 = vld [vmem:[#allocation9_spill] sm:$0xff]  ;;  %v4267_v26 = vld [vmem:[%s6360_s5 + $0x22c] ss:$12 sps:$4 sm:$0xff]   ;;  %v1921_v52 = vrot.slane %v5814_v48, %v6402_v12  ;;  %v1978_v18 = vrot.slane %v5823_v32, %v6402_v12 }
 0x343   :  { %3360 = vmatpush1.bf16.msra.mxu0 %v4230_v9  ;;  %4049 = vmatpush3.bf16.msra.mxu1 %v4234_v53  ;;  %v1909_v43 = vrot.slane %v5814_v48, %v6401_v28  ;;  %v1966_v29 = vrot.slane %v5823_v32, %v6401_v28  ;;  %v4265_v55 = vld [vmem:[%s6360_s5 + $0x228] ss:$12 sps:$4 sm:$0xff]   ;;  %v4269_v2 = vld [vmem:[%s6360_s5 + $0x230] ss:$12 sps:$4 sm:$0xff]   ;;  %v4278_v53 = vld [vmem:[%s6360_s5 + $0x3e0] ss:$12 sps:$4 sm:$0xff]  }
 0x344   :  { %3391 = vmatprep.mubr.bf16.mxu0 %v2014_v24  ;;  %3561 = vmatprep.mubr.bf16.mxu1 %v2014_v24  ;;  %v5901_v21 = vpack.c.bf16 %v2009_v41, %v2001_v45  ;;  %v1951_v57 = vmul.f32 %v1921_v52, %v1894_v20  ;;  %v4272_v38 = vld [vmem:[%s6360_s5 + $0x244] ss:$12 sps:$4 sm:$0xff]   ;;  %v4273_v37 = vld [vmem:[%s6360_s5 + $0x3c8] ss:$12 sps:$4 sm:$0xff]   ;;  %v1943_v39 = vmul.f32 %v1921_v52, %v1885_v14  ;;  %v4279_v34 = vld [vmem:[%s6360_s5 + $0x320] ss:$12 sps:$4 sm:$0xff]  }
 0x345   :  { %3361 = vmatprep.subr.bf16.mxu0 %v4237_v36  ;;  %4050 = vmatprep.subr.bf16.mxu1 %v4238_v1  ;;  %v1948_v16 = vmul.f32 %v1909_v43, %v1891_v13  ;;  %v1940_v0 = vmul.f32 %v1909_v43, %v1882_v25  ;;  %v4274_v44 = vld [vmem:[%s6360_s5 + $0x308] ss:$12 sps:$4 sm:$0xff]   ;;  %v4275_v6 = vld [vmem:[%s6360_s5 + $0x258] ss:$12 sps:$4 sm:$0xff]   ;;  %v4280_v45 = vld [vmem:[%s6360_s5 + $0x270] ss:$12 sps:$4 sm:$0xff]  }
 0x346   :  { %v2008_v46 = vadd.f32 %v1978_v18, %v1951_v57  ;;  %v2000_v61 = vadd.f32 %v1978_v18, %v1943_v39  ;;  %v4277_v32 = vld [vmem:[%s6360_s5 + $0x25c] ss:$12 sps:$4 sm:$0xff]   ;;  %v4282_v36 = vld [vmem:[%s6360_s5 + $0x274] ss:$12 sps:$4 sm:$0xff]   ;;  %v4283_v1 = vld [vmem:[%s6360_s5 + $0x3f8] ss:$12 sps:$4 sm:$0xff]  }
 0x347   :  { %3362 = vmatpush1.bf16.msra.mxu0 %v4235_v17  ;;  %4051 = vmatpush3.bf16.msra.mxu1 %v4239_v27  ;;  %v2005_v48 = vadd.f32 %v1966_v29, %v1948_v16  ;;  %v1997_v15 = vadd.f32 %v1966_v29, %v1940_v0  ;;  %v4284_v24 = vld [vmem:[%s6360_s5 + $0x338] ss:$12 sps:$4 sm:$0xff]   ;;  %v4288_v17 = vld [vmem:[%s6360_s5 + $0x410] ss:$12 sps:$4 sm:$0xff]   ;;  %v4285_v27 = vld [vmem:[%s6360_s5 + $0x288] ss:$12 sps:$4 sm:$0xff]  }
 0x348   :  { %3363 = vmatprep.subr.bf16.mxu0 %v4242_v40  ;;  %4052 = vmatprep.subr.bf16.mxu1 %v4243_v5  ;;  %v6006_v11 = vpack.c.bf16 %v2008_v46, %v2000_v61  ;;  %v4287_v41 = vld [vmem:[%s6360_s5 + $0x28c] ss:$12 sps:$4 sm:$0xff]   ;;  %v4289_v40 = vld [vmem:[%s6360_s5 + $0x350] ss:$12 sps:$4 sm:$0xff]   ;;  %v4313_v13 = vld [vmem:[%s6360_s5 + $0x548] ss:$12 sps:$4 sm:$0xff]  }
 0x349   :  { %v5997_v9 = vpack.c.bf16 %v2005_v48, %v1997_v15  ;;  %v4292_v5 = vld [vmem:[%s6360_s5 + $0x2a4] ss:$12 sps:$4 sm:$0xff]   ;;  %v4310_v25 = vld [vmem:[%s6360_s5 + $0x300] ss:$12 sps:$4 sm:$0xff]   ;;  %v4314_v43 = vld [vmem:[%s6360_s5 + $0x488] ss:$12 sps:$4 sm:$0xff]  }
 0x34a   :  { %v4317_v20 = vld [vmem:[%s6360_s5 + $0x31c] ss:$12 sps:$4 sm:$0xff]   ;;  %v4323_v16 = vld [vmem:[%s6360_s5 + $0x578] ss:$12 sps:$4 sm:$0xff]   ;;  %v4338_v39 = vld [vmem:[%s6360_s5 + $0x5c0] ss:$12 sps:$4 sm:$0xff]  }
 0x34b   :  { %3364 = vmatpush1.bf16.msra.mxu0 %v4240_v42  ;;  %4053 = vmatpush3.bf16.msra.mxu1 %v4244_v33  ;;  %v4293_v42 = vld [vmem:[%s6360_s5 + $0x428] ss:$12 sps:$4 sm:$0xff]   ;;  %v4290_v33 = vld [vmem:[%s6360_s5 + $0x2a0] ss:$12 sps:$4 sm:$0xff]   ;;  %v4320_v14 = vld [vmem:[%s6360_s5 + $0x330] ss:$12 sps:$4 sm:$0xff]  }
 0x34c   :  { %3365 = vmatprep.subr.bf16.mxu0 %v4247_v51  ;;  %4054 = vmatprep.subr.bf16.mxu1 %v4248_v56  ;;  %v4294_v51 = vld [vmem:[%s6360_s5 + $0x368] ss:$12 sps:$4 sm:$0xff]   ;;  %v4324_v12 = vld [vmem:[%s6360_s5 + $0x4b8] ss:$12 sps:$4 sm:$0xff]   ;;  %v4328_v0 = vld [vmem:[%s6360_s5 + $0x590] ss:$12 sps:$4 sm:$0xff]  }
 0x34d   :  { %v4297_v56 = vld [vmem:[%s6360_s5 + $0x2bc] ss:$12 sps:$4 sm:$0xff]   ;;  %v4327_v52 = vld [vmem:[%s6360_s5 + $0x34c] ss:$12 sps:$4 sm:$0xff]   ;;  %v4342_v46 = vld [vmem:[%s6360_s5 + $0x394] ss:$12 sps:$4 sm:$0xff]  }
 0x34e   :  { %v4325_v29 = vld [vmem:[%s6360_s5 + $0x348] ss:$12 sps:$4 sm:$0xff]   ;;  %v4329_v57 = vld [vmem:[%s6360_s5 + $0x4d0] ss:$12 sps:$4 sm:$0xff]   ;;  %v4335_v18 = vld [vmem:[%s6360_s5 + $0x378] ss:$12 sps:$4 sm:$0xff]  }
 0x34f   :  { %3366 = vmatpush1.bf16.msra.mxu0 %v4245_v50  ;;  %4055 = vmatpush3.bf16.msra.mxu1 %v4249_v63  ;;  %v4298_v50 = vld [vmem:[%s6360_s5 + $0x440] ss:$12 sps:$4 sm:$0xff]   ;;  %v4295_v63 = vld [vmem:[%s6360_s5 + $0x2b8] ss:$12 sps:$4 sm:$0xff]   ;;  %v4334_v48 = vld [vmem:[%s6360_s5 + $0x4e8] ss:$12 sps:$4 sm:$0xff]  }
 0x350   :  { %3367 = vmatprep.subr.bf16.mxu0 %v4252_v47  ;;  %4056 = vmatprep.subr.bf16.mxu1 %v4253_v58  ;;  %v4299_v47 = vld [vmem:[%s6360_s5 + $0x380] ss:$12 sps:$4 sm:$0xff]  }
 0x351   :  { %v4302_v58 = vld [vmem:[%s6360_s5 + $0x2d4] ss:$12 sps:$4 sm:$0xff]   ;;  %v4347_v61 = vld [vmem:[%s6360_s5 + $0x3ac] ss:$12 sps:$4 sm:$0xff]  }
 0x352   :  { %v4339_v15 = vld [vmem:[%s6360_s5 + $0x500] ss:$12 sps:$4 sm:$0xff]  }
 0x353   :  { %3368 = vmatpush1.bf16.msra.mxu0 %v4250_v23  ;;  %4057 = vmatpush3.bf16.msra.mxu1 %v4254_v7  ;;  %v4303_v23 = vld [vmem:[%s6360_s5 + $0x458] ss:$12 sps:$4 sm:$0xff]   ;;  %v4300_v7 = vld [vmem:[%s6360_s5 + $0x2d0] ss:$12 sps:$4 sm:$0xff]  }
 0x354   :  { %3369 = vmatprep.subr.bf16.mxu0 %v4257_v59  ;;  %4058 = vmatprep.subr.bf16.mxu1 %v4258_v10  ;;  %v4304_v59 = vld [vmem:[%s6360_s5 + $0x398] ss:$12 sps:$4 sm:$0xff]  }
 0x355   :  { %v4307_v10 = vld [vmem:[%s6360_s5 + $0x2ec] ss:$12 sps:$4 sm:$0xff]  }
 0x357   :  { %3370 = vmatpush1.bf16.msra.mxu0 %v4255_v49  ;;  %4059 = vmatpush3.bf16.msra.mxu1 %v4259_v3  ;;  %v4308_v49 = vld [vmem:[%s6360_s5 + $0x470] ss:$12 sps:$4 sm:$0xff]   ;;  %v4305_v3 = vld [vmem:[%s6360_s5 + $0x2e8] ss:$12 sps:$4 sm:$0xff]  }
 0x358   :  { %3371 = vmatprep.subr.bf16.mxu0 %v4262_v60  ;;  %4060 = vmatprep.subr.bf16.mxu1 %v4263_v8  ;;  %v4309_v60 = vld [vmem:[%s6360_s5 + $0x3b0] ss:$12 sps:$4 sm:$0xff]  }
 0x359   :  { %v4312_v8 = vld [vmem:[%s6360_s5 + $0x304] ss:$12 sps:$4 sm:$0xff]  }
 0x35b   :  { %3372 = vmatpush1.bf16.msra.mxu0 %v4260_v62  ;;  %4061 = vmatpush3.bf16.msra.mxu1 %v4264_v19  ;;  %v4318_v62 = vld [vmem:[%s6360_s5 + $0x560] ss:$12 sps:$4 sm:$0xff]   ;;  %v4315_v19 = vld [vmem:[%s6360_s5 + $0x318] ss:$12 sps:$4 sm:$0xff]  }
 0x35c   :  { %3373 = vmatprep.subr.bf16.mxu0 %v4267_v26  ;;  %4062 = vmatprep.subr.bf16.mxu1 %v4268_v4  ;;  %v4319_v26 = vld [vmem:[%s6360_s5 + $0x4a0] ss:$12 sps:$4 sm:$0xff]  }
 0x35d   :  { %v4322_v4 = vld [vmem:[%s6360_s5 + $0x334] ss:$12 sps:$4 sm:$0xff]  }
 0x35f   :  { %3374 = vmatpush1.bf16.msra.mxu0 %v4265_v55  ;;  %4063 = vmatpush3.bf16.msra.mxu1 %v4269_v2  ;;  %v4332_v55 = vld [vmem:[%s6360_s5 + $0x364] ss:$12 sps:$4 sm:$0xff]   ;;  %v4333_v2 = vld [vmem:[%s6360_s5 + $0x5a8] ss:$12 sps:$4 sm:$0xff]  }
 0x360   :  { %3375 = vmatprep.subr.bf16.mxu0 %v4272_v38  ;;  %4070 = vmatprep.subr.bf16.mxu1 %v4273_v37  ;;  %v4330_v38 = vld [vmem:[%s6360_s5 + $0x360] ss:$12 sps:$4 sm:$0xff]   ;;  %v4337_v37 = vld [vmem:[%s6360_s5 + $0x37c] ss:$12 sps:$4 sm:$0xff]  }
 0x362   :  { %3562 = vmatmul.mubr.bf16.vlgmr.msra.gmra.mrb[16].mxu1 %v5997_v9 }
 0x363   :  { %3376 = vmatpush1.bf16.msra.mxu0 %v4270_v30  ;;  %4071 = vmatpush3.bf16.msra.mxu1 %v4274_v44  ;;  %v4343_v30 = vld [vmem:[%s6360_s5 + $0x5d8] ss:$12 sps:$4 sm:$0xff]   ;;  %v4340_v44 = vld [vmem:[%s6360_s5 + $0x390] ss:$12 sps:$4 sm:$0xff]  }
 0x364   :  { %3602 = vmatprep.mubr.bf16.mxu1 %v6006_v11  ;;  %3377 = vmatprep.subr.bf16.mxu0 %v4277_v32  ;;  %v4348_v32 = vld [vmem:[%s6360_s5 + $0x5f0] ss:$12 sps:$4 sm:$0xff]  }
 0x365   :  { %4072 = vmatprep.subr.bf16.mxu1 %v4278_v53  ;;  %v4345_v53 = vld [vmem:[%s6360_s5 + $0x3a8] ss:$12 sps:$4 sm:$0xff]  }
 0x367   :  { %3378 = vmatpush1.bf16.msra.mxu0 %v4275_v6  ;;  %4073 = vmatpush3.bf16.msra.mxu1 %v4279_v34  ;;  %v4352_v6 = vld [vmem:[%s6360_s5 + $0x3c4] ss:$12 sps:$4 sm:$0xff]   ;;  %v4350_v34 = vld [vmem:[%s6360_s5 + $0x3c0] ss:$12 sps:$4 sm:$0xff]  }
 0x368   :  { %3379 = vmatprep.subr.bf16.mxu0 %v4282_v36  ;;  %4074 = vmatprep.subr.bf16.mxu1 %v4283_v1  ;;  %v4355_v36 = vld [vmem:[%s6360_s5 + $0x3dc] ss:$12 sps:$4 sm:$0xff]   ;;  %v4353_v1 = vld [vmem:[%s6360_s5 + $0x3d8] ss:$12 sps:$4 sm:$0xff]  }
 0x36b   :  { %3380 = vmatpush1.bf16.msra.mxu0 %v4280_v45  ;;  %4075 = vmatpush3.bf16.msra.mxu1 %v4284_v24  ;;  %v4358_v45 = vld [vmem:[%s6360_s5 + $0x3f4] ss:$12 sps:$4 sm:$0xff]   ;;  %v4356_v24 = vld [vmem:[%s6360_s5 + $0x3f0] ss:$12 sps:$4 sm:$0xff]  }
 0x36c   :  { %3381 = vmatprep.subr.bf16.mxu0 %v4287_v41  ;;  %4076 = vmatprep.subr.bf16.mxu1 %v4288_v17  ;;  %v4361_v41 = vld [vmem:[%s6360_s5 + $0x40c] ss:$12 sps:$4 sm:$0xff]   ;;  %v4359_v17 = vld [vmem:[%s6360_s5 + $0x408] ss:$12 sps:$4 sm:$0xff]  }
 0x36f   :  { %3382 = vmatpush1.bf16.msra.mxu0 %v4285_v27  ;;  %4077 = vmatpush3.bf16.msra.mxu1 %v4289_v40  ;;  %v4364_v27 = vld [vmem:[%s6360_s5 + $0x424] ss:$12 sps:$4 sm:$0xff]   ;;  %v4362_v40 = vld [vmem:[%s6360_s5 + $0x420] ss:$12 sps:$4 sm:$0xff]  }
 0x370   :  { %3383 = vmatprep.subr.bf16.mxu0 %v4292_v5  ;;  %4078 = vmatprep.subr.bf16.mxu1 %v4293_v42  ;;  %v4367_v5 = vld [vmem:[%s6360_s5 + $0x43c] ss:$12 sps:$4 sm:$0xff]   ;;  %v4365_v42 = vld [vmem:[%s6360_s5 + $0x438] ss:$12 sps:$4 sm:$0xff]  }
 0x373   :  { %3384 = vmatpush1.bf16.msra.mxu0 %v4290_v33  ;;  %4079 = vmatpush3.bf16.msra.mxu1 %v4294_v51  ;;  %v4370_v33 = vld [vmem:[%s6360_s5 + $0x454] ss:$12 sps:$4 sm:$0xff]   ;;  %v4368_v51 = vld [vmem:[%s6360_s5 + $0x450] ss:$12 sps:$4 sm:$0xff]  }
 0x374   :  { %3385 = vmatprep.subr.bf16.mxu0 %v4297_v56  ;;  %4080 = vmatprep.subr.bf16.mxu1 %v4298_v50  ;;  %v4373_v56 = vld [vmem:[%s6360_s5 + $0x46c] ss:$12 sps:$4 sm:$0xff]   ;;  %v4371_v50 = vld [vmem:[%s6360_s5 + $0x468] ss:$12 sps:$4 sm:$0xff]  }
 0x377   :  { %3386 = vmatpush1.bf16.msra.mxu0 %v4295_v63  ;;  %4081 = vmatpush3.bf16.msra.mxu1 %v4299_v47  ;;  %v4376_v63 = vld [vmem:[%s6360_s5 + $0x484] ss:$12 sps:$4 sm:$0xff]   ;;  %v4374_v47 = vld [vmem:[%s6360_s5 + $0x480] ss:$12 sps:$4 sm:$0xff]  }
 0x378   :  { %3387 = vmatprep.subr.bf16.mxu0 %v4302_v58  ;;  %4082 = vmatprep.subr.bf16.mxu1 %v4303_v23  ;;  %v4379_v58 = vld [vmem:[%s6360_s5 + $0x49c] ss:$12 sps:$4 sm:$0xff]   ;;  %v4377_v23 = vld [vmem:[%s6360_s5 + $0x498] ss:$12 sps:$4 sm:$0xff]  }
 0x37b   :  { %3388 = vmatpush1.bf16.msra.mxu0 %v4300_v7  ;;  %4083 = vmatpush3.bf16.msra.mxu1 %v4304_v59  ;;  %v4382_v7 = vld [vmem:[%s6360_s5 + $0x4b4] ss:$12 sps:$4 sm:$0xff]   ;;  %v4380_v59 = vld [vmem:[%s6360_s5 + $0x4b0] ss:$12 sps:$4 sm:$0xff]  }
 0x37c   :  { %3389 = vmatprep.subr.bf16.mxu0 %v4307_v10  ;;  %4084 = vmatprep.subr.bf16.mxu1 %v4308_v49  ;;  %v4388_v10 = vld [vmem:[%s6360_s5 + $0x4e4] ss:$12 sps:$4 sm:$0xff]   ;;  %v4386_v49 = vld [vmem:[%s6360_s5 + $0x4e0] ss:$12 sps:$4 sm:$0xff]  }
 0x37f   :  { %3390 = vmatpush1.bf16.msra.mxu0 %v4305_v3  ;;  %4085 = vmatpush3.bf16.msra.mxu1 %v4309_v60  ;;  %v4391_v3 = vld [vmem:[%s6360_s5 + $0x4fc] ss:$12 sps:$4 sm:$0xff]   ;;  %v4389_v60 = vld [vmem:[%s6360_s5 + $0x4f8] ss:$12 sps:$4 sm:$0xff]  }
 0x380   :  { %3402 = vmatprep.subr.bf16.mxu0 %v4312_v8  ;;  %4092 = vmatprep.subr.bf16.mxu1 %v4313_v13  ;;  %v4394_v8 = vld [vmem:[%s6360_s5 + $0x514] ss:$12 sps:$4 sm:$0xff]   ;;  %v4392_v13 = vld [vmem:[%s6360_s5 + $0x510] ss:$12 sps:$4 sm:$0xff]  }
 0x382   :  { %3392 = vmatmul.mubr.bf16.vlgmr.msra.gmra.mrb[8].mxu0 %v5997_v9  ;;  %3603 = vmatmul.mubr.bf16.vlgmr.msra.gmra.mrb[20].mxu1 %v5879_v22  ;;  %v4344_v9 = vld [vmem:[%s6360_s5 + $0x518] ss:$12 sps:$4 sm:$0xff]  }
 0x383   :  { %3403 = vmatpush1.bf16.msra.mxu0 %v4310_v25  ;;  %3434 = vmatprep.mubr.bf16.mxu0 %v6006_v11  ;;  %v4349_v11 = vld [vmem:[%s6360_s5 + $0x530] ss:$12 sps:$4 sm:$0xff]   ;;  %v4397_v25 = vld [vmem:[%s6360_s5 + $0x52c] ss:$12 sps:$4 sm:$0xff]  }
 0x384   :  { %4093 = vmatpush3.bf16.msra.mxu1 %v4314_v43  ;;  %3643 = vmatprep.mubr.bf16.mxu1 %v5887_v35  ;;  %v4395_v43 = vld [vmem:[%s6360_s5 + $0x528] ss:$12 sps:$4 sm:$0xff]  }
 0x385   :  { %3404 = vmatprep.subr.bf16.mxu0 %v4317_v20  ;;  %4094 = vmatprep.subr.bf16.mxu1 %v4318_v62  ;;  %v4400_v20 = vld [vmem:[%s6360_s5 + $0x544] ss:$12 sps:$4 sm:$0xff]   ;;  %v4398_v62 = vld [vmem:[%s6360_s5 + $0x540] ss:$12 sps:$4 sm:$0xff]  }
 0x387   :  { %3405 = vmatpush1.bf16.msra.mxu0 %v4315_v19  ;;  %v4403_v19 = vld [vmem:[%s6360_s5 + $0x55c] ss:$12 sps:$4 sm:$0xff]  }
 0x388   :  { %4095 = vmatpush3.bf16.msra.mxu1 %v4319_v26  ;;  %3406 = vmatprep.subr.bf16.mxu0 %v4322_v4  ;;  %v4401_v26 = vld [vmem:[%s6360_s5 + $0x558] ss:$12 sps:$4 sm:$0xff]   ;;  %v4406_v4 = vld [vmem:[%s6360_s5 + $0x574] ss:$12 sps:$4 sm:$0xff]  }
 0x389   :  { %4096 = vmatprep.subr.bf16.mxu1 %v4323_v16  ;;  %v4404_v16 = vld [vmem:[%s6360_s5 + $0x570] ss:$12 sps:$4 sm:$0xff]  }
 0x38b   :  { %3407 = vmatpush1.bf16.msra.mxu0 %v4320_v14  ;;  %v4409_v14 = vld [vmem:[%s6360_s5 + $0x58c] ss:$12 sps:$4 sm:$0xff]  }
 0x38c   :  { %4097 = vmatpush3.bf16.msra.mxu1 %v4324_v12  ;;  %3408 = vmatprep.subr.bf16.mxu0 %v4327_v52  ;;  %v4407_v12 = vld [vmem:[%s6360_s5 + $0x588] ss:$12 sps:$4 sm:$0xff]   ;;  %v4412_v52 = vld [vmem:[%s6360_s5 + $0x5a4] ss:$12 sps:$4 sm:$0xff]  }
 0x38d   :  { %4098 = vmatprep.subr.bf16.mxu1 %v4328_v0  ;;  %v4410_v0 = vld [vmem:[%s6360_s5 + $0x5a0] ss:$12 sps:$4 sm:$0xff]  }
 0x38f   :  { %3409 = vmatpush1.bf16.msra.mxu0 %v4325_v29  ;;  %v4415_v29 = vld [vmem:[%s6360_s5 + $0x5bc] ss:$12 sps:$4 sm:$0xff]  }
 0x390   :  { %4099 = vmatpush3.bf16.msra.mxu1 %v4329_v57  ;;  %3410 = vmatprep.subr.bf16.mxu0 %v4332_v55  ;;  %v4413_v57 = vld [vmem:[%s6360_s5 + $0x5b8] ss:$12 sps:$4 sm:$0xff]   ;;  %v4418_v55 = vld [vmem:[%s6360_s5 + $0x5d4] ss:$12 sps:$4 sm:$0xff]  }
 0x391   :  { %4100 = vmatprep.subr.bf16.mxu1 %v4333_v2  ;;  %v4416_v2 = vld [vmem:[%s6360_s5 + $0x5d0] ss:$12 sps:$4 sm:$0xff]  }
 0x393   :  { %3411 = vmatpush1.bf16.msra.mxu0 %v4330_v38  ;;  %v4421_v38 = vld [vmem:[%s6360_s5 + $0x5ec] ss:$12 sps:$4 sm:$0xff]  }
 0x394   :  { %4101 = vmatpush3.bf16.msra.mxu1 %v4334_v48  ;;  %3412 = vmatprep.subr.bf16.mxu0 %v4337_v37  ;;  %v4419_v48 = vld [vmem:[%s6360_s5 + $0x5e8] ss:$12 sps:$4 sm:$0xff]  }
 0x395   :  { %4102 = vmatprep.subr.bf16.mxu1 %v4338_v39 }
 0x397   :  { %3413 = vmatpush1.bf16.msra.mxu0 %v4335_v18 }
 0x398   :  { %4103 = vmatpush3.bf16.msra.mxu1 %v4339_v15  ;;  %3414 = vmatprep.subr.bf16.mxu0 %v4342_v46 }
 0x399   :  { %4104 = vmatprep.subr.bf16.mxu1 %v4343_v30 }
 0x39b   :  { %3415 = vmatpush1.bf16.msra.mxu0 %v4340_v44  ;;  %v2275_v44 = vld [vmem:[%s6361_s6] sm:$0x7] }
 0x39c   :  { %4105 = vmatpush3.bf16.msra.mxu1 %v4344_v9  ;;  %3416 = vmatprep.subr.bf16.mxu0 %v4347_v61  ;;  %v2288_v9 = vrot.slane %v2275_v44, %v6401_v28 }
 0x39d   :  { %4106 = vmatprep.subr.bf16.mxu1 %v4348_v32 }
 0x39f   :  { %3417 = vmatpush1.bf16.msra.mxu0 %v4345_v53 }
 0x3a0   :  { %4107 = vmatpush3.bf16.msra.mxu1 %v4349_v11  ;;  %3418 = vmatprep.subr.bf16.mxu0 %v4352_v6 }
 0x3a3   :  { %3644 = vmatmul.mubr.bf16.vlgmr.msra.gmra.mrb[24].mxu1 %v5901_v21  ;;  %3419 = vmatpush1.bf16.msra.mxu0 %v4350_v34 }
 0x3a4   :  { %3420 = vmatprep.subr.bf16.mxu0 %v4355_v36 }
 0x3a7   :  { %3421 = vmatpush1.bf16.msra.mxu0 %v4353_v1 }
 0x3a8   :  { %3422 = vmatprep.subr.bf16.mxu0 %v4358_v45 }
 0x3ab   :  { %3423 = vmatpush1.bf16.msra.mxu0 %v4356_v24 }
 0x3ac   :  { %3424 = vmatprep.subr.bf16.mxu0 %v4361_v41 }
 0x3af   :  { %3425 = vmatpush1.bf16.msra.mxu0 %v4359_v17 }
 0x3b0   :  { %3426 = vmatprep.subr.bf16.mxu0 %v4364_v27 }
 0x3b3   :  { %3427 = vmatpush1.bf16.msra.mxu0 %v4362_v40 }
 0x3b4   :  { %3428 = vmatprep.subr.bf16.mxu0 %v4367_v5 }
 0x3b7   :  { %3429 = vmatpush1.bf16.msra.mxu0 %v4365_v42 }
 0x3b8   :  { %3430 = vmatprep.subr.bf16.mxu0 %v4370_v33 }
 0x3bb   :  { %3431 = vmatpush1.bf16.msra.mxu0 %v4368_v51 }
 0x3bc   :  { %3432 = vmatprep.subr.bf16.mxu0 %v4373_v56 }
 0x3bf   :  { %3433 = vmatpush1.bf16.msra.mxu0 %v4371_v50 }
 0x3c0   :  { %3445 = vmatprep.subr.bf16.mxu0 %v4376_v63 }
 0x3c2   :  { %3435 = vmatmul.mubr.bf16.vlgmr.msra.gmra.mrb[8].mxu0 %v5879_v22  ;;  %v4385_v22 = vld [vmem:[%s6360_s5 + $0x4cc] ss:$12 sps:$4 sm:$0xff]  }
 0x3c3   :  { %3446 = vmatpush1.bf16.msra.mxu0 %v4374_v47  ;;  %3477 = vmatprep.mubr.bf16.mxu0 %v5887_v35  ;;  %v4383_v35 = vld [vmem:[%s6360_s5 + $0x4c8] ss:$12 sps:$4 sm:$0xff]   ;;  %s4519_s5 = smov [#allocation2]  }
 0x3c4   :  { %3447 = vmatprep.subr.bf16.mxu0 %v4379_v58  ;;  %s3663_s6 = sshll.u32 %s4519_s5, 4  ;;  %s3664_s6 = int_to_ptr.vmem [resolvable:$true] %s3663_s6 }
 0x3c5   :  { %s4494_s14 = scalar_lea.vmem %s3664_s6, 768  ;;  %p4499_p1 = scmp.lt.s32.totalorder %s3664_s6, %s3664_s6 }
 0x3c6   :  { %p4495_p0 = scmp.ne.s32.totalorder %s3664_s6, %s4494_s14  ;;  %p4500_p2 = scmp.lt.s32.totalorder %s4494_s14, %s4494_s14 }
 0x3c7   :  { %3448 = vmatpush1.bf16.msra.mxu0 %v4377_v23 }
 0x3c8   :  { %3449 = vmatprep.subr.bf16.mxu0 %v4382_v7  ;;  %v2280_v7 = vrot.slane %v2275_v44, %v6398_v54  ;;  %p4501_p3 = por %p4500_p2, %p4499_p1 }
 0x3ca   :  { %p4502_p4 = pnand %p4501_p3, %p4495_p0 }
 0x3cb   :  { %3450 = vmatpush1.bf16.msra.mxu0 %v4380_v59  ;;  %v2284_v59 = vrot.slane %v2275_v44, %v6396_v31 }
 0x3cc   :  { %3451 = vmatprep.subr.bf16.mxu0 %v4385_v22 }
 0x3cf   :  { %3452 = vmatpush1.bf16.msra.mxu0 %v4383_v35 }
 0x3d0   :  { %3453 = vmatprep.subr.bf16.mxu0 %v4388_v10 }
 0x3d3   :  { %3454 = vmatpush1.bf16.msra.mxu0 %v4386_v49 }
 0x3d4   :  { %3455 = vmatprep.subr.bf16.mxu0 %v4391_v3 }
 0x3d7   :  { %3456 = vmatpush1.bf16.msra.mxu0 %v4389_v60 }
 0x3d8   :  { %3457 = vmatprep.subr.bf16.mxu0 %v4394_v8 }
 0x3db   :  { %3458 = vmatpush1.bf16.msra.mxu0 %v4392_v13 }
 0x3dc   :  { %3459 = vmatprep.subr.bf16.mxu0 %v4397_v25 }
 0x3df   :  { %3460 = vmatpush1.bf16.msra.mxu0 %v4395_v43 }
 0x3e0   :  { %3461 = vmatprep.subr.bf16.mxu0 %v4400_v20 }
 0x3e3   :  { %3462 = vmatpush1.bf16.msra.mxu0 %v4398_v62 }
 0x3e4   :  { %3463 = vmatprep.subr.bf16.mxu0 %v4403_v19 }
 0x3e7   :  { %3464 = vmatpush1.bf16.msra.mxu0 %v4401_v26 }
 0x3e8   :  { %3465 = vmatprep.subr.bf16.mxu0 %v4406_v4 }
 0x3eb   :  { %3466 = vmatpush1.bf16.msra.mxu0 %v4404_v16 }
 0x3ec   :  { %3467 = vmatprep.subr.bf16.mxu0 %v4409_v14 }
 0x3ef   :  { %3468 = vmatpush1.bf16.msra.mxu0 %v4407_v12 }
 0x3f0   :  { %3469 = vmatprep.subr.bf16.mxu0 %v4412_v52 }
 0x3f3   :  { %3470 = vmatpush1.bf16.msra.mxu0 %v4410_v0 }
 0x3f4   :  { %3471 = vmatprep.subr.bf16.mxu0 %v4415_v29 }
 0x3f7   :  { %3472 = vmatpush1.bf16.msra.mxu0 %v4413_v57 }
 0x3f8   :  { %3473 = vmatprep.subr.bf16.mxu0 %v4418_v55 }
 0x3fb   :  { %3474 = vmatpush1.bf16.msra.mxu0 %v4416_v2 }
 0x3fc   :  { %3475 = vmatprep.subr.bf16.mxu0 %v4421_v38 }
 0x3ff   :  { %3476 = vmatpush1.bf16.msra.mxu0 %v4419_v48 }
 0x402   :  { %3478 = vmatmul.mubr.bf16.vlgmr.msra.gmra.mrb[8].mxu0 %v5901_v21 }
 0x415   :  { %v4042_v37 = vpop.f32.mrb[12].mxu1 }
 0x416   :  { %v4043_v39 = vpop.f32.mrb[13].mxu1 }
 0x417   :  { %v4044_v18 = vadd.f32 %v4043_v39, %v4042_v37  ;;  %v4045_v15 = vpop.f32.mrb[14].mxu1 }
 0x418   :  { %v4046_v46 = vpop.f32.mrb[15].mxu1 }
 0x419   :  { %v4047_v30 = vadd.f32 %v4046_v46, %v4045_v15  ;;  %v3523_v53 = vadd.f32 %v4044_v18, %v2288_v9 }
 0x41b   :  { %v3526_v36 = vadd.f32 %v4047_v30, %v2288_v9 }
 0x435   :  { %v4064_v61 = vpop.f32.mrb[16].mxu1 }
 0x436   :  { %v4065_v32 = vpop.f32.mrb[17].mxu1 }
 0x437   :  { %v4066_v11 = vadd.f32 %v4065_v32, %v4064_v61  ;;  %v4067_v6 = vpop.f32.mrb[18].mxu1 }
 0x438   :  { %v4068_v34 = vpop.f32.mrb[19].mxu1 }
 0x439   :  { %v3564_v21 = vadd.f32 %v4066_v11, %v3523_v53  ;;  %v4069_v1 = vadd.f32 %v4068_v34, %v4067_v6 }
 0x43b   :  { %v3567_v45 = vadd.f32 %v4069_v1, %v3526_v36 }
 0x455   :  { %v4086_v24 = vpop.f32.mrb[20].mxu1 }
 0x456   :  { %v4087_v41 = vpop.f32.mrb[21].mxu1 }
 0x457   :  { %v4088_v17 = vadd.f32 %v4087_v41, %v4086_v24  ;;  %v4089_v27 = vpop.f32.mrb[22].mxu1 }
 0x458   :  { %v4090_v40 = vpop.f32.mrb[23].mxu1 }
 0x459   :  { %v3605_v5 = vadd.f32 %v4088_v17, %v3564_v21  ;;  %v4091_v42 = vadd.f32 %v4090_v40, %v4089_v27 }
 0x45b   :  { %v3608_v33 = vadd.f32 %v4091_v42, %v3567_v45 }
 0x476   :  { %v4108_v51 = vpop.f32.mrb[24].mxu1 }
 0x477   :  { %v4109_v28 = vpop.f32.mrb[25].mxu1 }
 0x478   :  { %v4110_v56 = vadd.f32 %v4109_v28, %v4108_v51  ;;  %v4111_v50 = vpop.f32.mrb[26].mxu1 }
 0x479   :  { %v4112_v63 = vpop.f32.mrb[27].mxu1 }
 0x47a   :  { %v3646_v47 = vadd.f32 %v4110_v56, %v3605_v5  ;;  %v4113_v58 = vadd.f32 %v4112_v63, %v4111_v50 }
 0x47c   :  { %3654 = vst.msk [vmem:[#allocation2 + $0x10] sm:$0xff] %vm983_vm1, %v3646_v47  ;;  %v3649_v23 = vadd.f32 %v4113_v58, %v3608_v33 }
 0x47e   :  { %3657 = vst.msk [vmem:[#allocation2 + $0x28] sm:$0xff] %vm983_vm1, %v3649_v23 }
 0x4d5   :  { %v3479_v22 = vpop.f32.mrb[8].mxu0 }
 0x4d6   :  { %v4134_v35 = vadd.f32 %v3479_v22, %v2280_v7  ;;  %v3481_v10 = vpop.f32.mrb[9].mxu0 }
 0x4d7   :  { %v4135_v49 = vadd.f32 %v3481_v10, %v2284_v59  ;;  %v3483_v3 = vpop.f32.mrb[10].mxu0 }
 0x4d8   :  { %3652 = vst [vmem:[#allocation2] sm:$0xff] %v4134_v35  ;;  %v4136_v60 = vadd.f32 %v3483_v3, %v2280_v7  ;;  %v3485_v8 = vpop.f32.mrb[11].mxu0 }
 0x4d9   :  { %3653 = vst [vmem:[#allocation2 + $0x8] sm:$0xff] %v4135_v49  ;;  %v4137_v13 = vadd.f32 %v3485_v8, %v2284_v59 }
 0x4da   :  { %3655 = vst [vmem:[#allocation2 + $0x18] sm:$0xff] %v4136_v60 }
 0x4db   :  { %3656 = vst [vmem:[#allocation2 + $0x20] sm:$0xff] %v4137_v13 }
 0x4dc   :  { %4505 = shalt.err (!%p4502_p4)
}
 0x4dd   :  { %s4506_s17 = scalar_lea.hbm %s6362_s7, 768 }
 0x4de   :  { %p4507_p5 = scmp.ne.s32.totalorder %s6362_s7, %s4506_s17  ;;  %p4510_p6 = scmp.lt.u32.totalorder %s4506_s17, %s6362_s7 }
 0x4e0   :  { %p4512_p7 = pnand %p4510_p6, %p4507_p5 }
 0x4e2   :  { %4515 = shalt.err (!%p4512_p7)
}
 0x4e3   :  { %s4520_s22 = smov 384   ;;  %s4521_s23 = smov 24  }
 0x4e4   :  { %3669 = dma.vmem_to_hbm [thread:$0]  %s3664_s6, 768, %s6362_s7, [#allocation3], %s4520_s22, %s4520_s22, %s4521_s23  }
 0x4e5   :  { %4516 = dma.done.wait [#allocation3], 768  }
 0x4e6   :  { %4517 = vsyncadd [#allocation3], 4294966528 }
 0x4e7   :  { %3673 = vsyncpa [#allocation3], 1 }

</bundles_post_ra>
